<compile_context>
chip_gen: v7x
topology: tpu7x:2x2x1
jax: 0.10.0
libtpu: 0.0.40
codegen_flags: <defaults>
</compile_context>

<pallas_src>
import jax
import jax.numpy as jnp
from jax.experimental import pallas as pl
from jax.experimental.pallas import tpu as pltpu

HP = 128  # lane-aligned (padded) width of each gate block / hidden state


# ----------------------------------------------------------------------------
# Pallas kernel: full GRU recurrence + linear head, everything resident on-chip.
# ----------------------------------------------------------------------------
def gru_kernel(x_ref, wih_ref, whh_ref, bih_ref, bhhn_ref,
               wlin_ref, blin_ref, out_ref):
    # x_ref   : SMEM (T, B) f32   time-major scalar inputs (input_size == 1)
    # wih_ref : VMEM (1, 3*HP) f32   input->gates row, gate-block padded [r|z|n]
    # whh_ref : VMEM (HP, 3*HP) bf16 hidden->gates; padded rows/cols are 0
    # bih_ref : VMEM (1, 3*HP) f32   b_ih with b_hh_r, b_hh_z folded in
    # bhhn_ref: VMEM (1, HP)   f32   b_hh_n (must stay inside the r* term)
    # wlin_ref: VMEM (HP, HP)  f32   linear head in column 0, rest 0
    # blin_ref: VMEM (1, HP)   f32   bias in column 0, rest 0
    # out_ref : VMEM (B, HP)   f32   lane-dense output slab; column 0 = result
    T, B = x_ref.shape

    wih = wih_ref[...]                     # (1, 3*HP)
    whh_rz = whh_ref[:, : 2 * HP]          # (HP, 2*HP) bf16, loaded once
    whh_n = whh_ref[:, 2 * HP:]            # (HP, HP)   bf16, loaded once

    # Hoist broadcasts out of the unrolled loop (JAX does not CSE broadcast_in_dim).
    bih_b = jnp.broadcast_to(bih_ref[...], (B, 3 * HP))    # (B, 3*HP)
    bhhn_b = jnp.broadcast_to(bhhn_ref[...], (B, HP))      # (B, HP)

    h = jnp.zeros((B, HP), dtype=jnp.float32)

    # T is small and static -> full unroll gives the scheduler visibility to
    # overlap MXU / EUP / VPU work across adjacent steps.
    # TODO(synk): for long sequences switch to lax.fori_loop over t (gi built
    # per chunk) to avoid vreg spills from the unrolled live ranges.
    for t in range(T):
        # Input projection via scalar splats from SMEM (input_size == 1);
        # independent of h, so it runs off the serial MXU critical path.
        gi = jnp.concatenate([x_ref[t, b] * wih for b in range(B)],
                             axis=0) + bih_b                     # (B, 3*HP)

        # Single-pass bf16 MXU matmul with f32 accumulation; split r|z vs n so
        # the sigmoids can start as soon as the first result pops.
        h_bf = h.astype(jnp.bfloat16)
        gh_rz = jnp.dot(h_bf, whh_rz, preferred_element_type=jnp.float32)  # (B, 2*HP)
        gh_n = jnp.dot(h_bf, whh_n, preferred_element_type=jnp.float32)    # (B, HP)

        rz = jax.nn.sigmoid(gi[:, : 2 * HP] + gh_rz)
        r = rz[:, :HP]
        z = rz[:, HP:]
        n = jnp.tanh(gi[:, 2 * HP:] + r * (gh_n + bhhn_b))
        # Gate nonlinearities / h update stay f32 (v5e VPU/EUP have no bf16 path).
        h = (1.0 - z) * n + z * h

    # Linear head into a lane-dense (B, HP) output (column 0 = prediction).
    out_ref[...] = (jnp.dot(h, wlin_ref[...], preferred_element_type=jnp.float32)
                    + blin_ref[...])


# ----------------------------------------------------------------------------
# Wrapper: batch-first x (B, T, 1) -> (B, 1), matching PyTorch semantics.
# ----------------------------------------------------------------------------
def gru_model_forward(x, params):
    (w_ih, w_hh, b_ih, b_hh, w_lin, b_lin) = params
    B, T, I = x.shape
    H = w_hh.shape[1]          # PyTorch: weight_hh is (3H, H)
    assert I == 1, "kernel uses the I==1 scalar-splat form of the input projection"
    assert H <= HP

    f32 = jnp.float32

    # Time-major scalar inputs for SMEM: (T, B).
    x_tm = jnp.transpose(x[..., 0], (1, 0)).astype(f32)

    def pad_gates(w_t):
        # (rows, 3H) -> (rows, 3*HP): pad each gate block [r|z|n] to 128 lanes.
        rows = w_t.shape[0]
        g = w_t.reshape(rows, 3, H)
        g = jnp.pad(g, ((0, 0), (0, 0), (0, HP - H)))
        return g.reshape(rows, 3 * HP)

    wih_p = pad_gates(jnp.transpose(w_ih).astype(f32))                           # (1, 3*HP)
    whh_p = jnp.pad(pad_gates(jnp.transpose(w_hh).astype(f32)),
                    ((0, HP - H), (0, 0))).astype(jnp.bfloat16)                  # (HP, 3*HP) bf16

    # Fold b_hh_r and b_hh_z into the hoisted input bias; keep only b_hh_n per step.
    bih_fold = jnp.concatenate([b_ih[:2 * H] + b_hh[:2 * H], b_ih[2 * H:]])
    bih_p = pad_gates(bih_fold.reshape(1, 3 * H).astype(f32))                    # (1, 3*HP)
    bhhn_p = jnp.pad(b_hh[2 * H:].reshape(1, H).astype(f32),
                     ((0, 0), (0, HP - H)))                                      # (1, HP)

    wlin_p = jnp.pad(jnp.transpose(w_lin).astype(f32),
                     ((0, HP - H), (0, HP - 1)))                                 # (HP, HP)
    blin_p = jnp.pad(b_lin.reshape(1, 1).astype(f32), ((0, 0), (0, HP - 1)))     # (1, HP)

    vmem = pl.BlockSpec(memory_space=pltpu.MemorySpace.VMEM)
    smem = pl.BlockSpec(memory_space=pltpu.MemorySpace.SMEM)
    out_pad = pl.pallas_call(
        gru_kernel,
        out_shape=jax.ShapeDtypeStruct((B, HP), jnp.float32),
        in_specs=[smem, vmem, vmem, vmem, vmem, vmem, vmem],
        out_specs=vmem,
    )(x_tm, wih_p, whh_p, bih_p, bhhn_p, wlin_p, blin_p)
    # TODO(synk): for real serving batches add a grid over B (row blocks, weight
    # specs with constant index_maps) and dimension_semantics=("parallel",) so
    # v7x's second TensorCore gets work; at B=2 a grid is moot.
    return out_pad[:, :1]                                                        # (B, 1)


# ----------------------------------------------------------------------------
# Pure-JAX reference (PyTorch GRU math, unpadded, f32) for a correctness check.
# ----------------------------------------------------------------------------
def gru_model_reference(x, params):
    (w_ih, w_hh, b_ih, b_hh, w_lin, b_lin) = params
    B, T, I = x.shape
    H = w_hh.shape[1]
    h = jnp.zeros((B, H), jnp.float32)
    for t in range(T):
        x_t = x[:, t, :]
        gi = x_t @ w_ih.T + b_ih
        gh = h @ w_hh.T + b_hh
        r = jax.nn.sigmoid(gi[:, 0:H] + gh[:, 0:H])
        z = jax.nn.sigmoid(gi[:, H:2 * H] + gh[:, H:2 * H])
        n = jnp.tanh(gi[:, 2 * H:3 * H] + r * gh[:, 2 * H:3 * H])
        h = (1.0 - z) * n + z * h
    return h @ w_lin.T + b_lin


def init_params(key, input_size=1, hidden_size=50):
    # Deterministic init mimicking PyTorch's U(-1/sqrt(H), 1/sqrt(H)).
    k = 1.0 / jnp.sqrt(jnp.float32(hidden_size))
    ks = jax.random.split(key, 6)
    w_ih = jax.random.uniform(ks[0], (3 * hidden_size, input_size),
                              jnp.float32, -k, k)
    w_hh = jax.random.uniform(ks[1], (3 * hidden_size, hidden_size),
                              jnp.float32, -k, k)
    b_ih = jax.random.uniform(ks[2], (3 * hidden_size,), jnp.float32, -k, k)
    b_hh = jax.random.uniform(ks[3], (3 * hidden_size,), jnp.float32, -k, k)
    w_lin = jax.random.uniform(ks[4], (1, hidden_size), jnp.float32, -k, k)
    b_lin = jax.random.uniform(ks[5], (1,), jnp.float32, -k, k)
    return (w_ih, w_hh, b_ih, b_hh, w_lin, b_lin)


if __name__ == "__main__":
    key = jax.random.PRNGKey(0)
    k_p, k_x = jax.random.split(key)

    batch, seq, input_size, hidden_size = 2, 8, 1, 50
    params = init_params(k_p, input_size, hidden_size)
    x = jax.random.normal(k_x, (batch, seq, input_size), jnp.float32)

    out = gru_model_forward(x, params)
    out = jax.block_until_ready(out)

    ref = gru_model_reference(x, params)
    assert out.shape == (batch, 1)
    # bf16 recurrence matmuls -> relax tolerance vs. the f32 reference.
    assert jnp.allclose(out, ref, atol=1e-2, rtol=1e-2), (out, ref)

    print("KERNEL_OK")
</pallas_src>

<mosaic_0001>
module attributes {stable_mosaic.version = 11 : i64} {
  func.func @gru_kernel(%arg0: memref<8x2xf32, #tpu.memory_space<smem>>, %arg1: memref<1x384xf32, #tpu.memory_space<vmem>>, %arg2: memref<128x384xbf16, #tpu.memory_space<vmem>>, %arg3: memref<1x384xf32, #tpu.memory_space<vmem>>, %arg4: memref<1x128xf32, #tpu.memory_space<vmem>>, %arg5: memref<128x128xf32, #tpu.memory_space<vmem>>, %arg6: memref<1x128xf32, #tpu.memory_space<vmem>>, %arg7: memref<2x128xf32, #tpu.memory_space<vmem>>) attributes {dimension_semantics = [], scalar_prefetch = 0 : i64, scratch_operands = 0 : i64, tpu.core_type = #tpu.core_type<tc>} {
    %c0 = arith.constant 0 : index
    %c0_0 = arith.constant 0 : index
    %0 = vector.load %arg1[%c0, %c0_0] : memref<1x384xf32, #tpu.memory_space<vmem>>, vector<1x384xf32>
    %c0_1 = arith.constant 0 : index
    %c0_2 = arith.constant 0 : index
    %1 = vector.load %arg2[%c0_1, %c0_2] : memref<128x384xbf16, #tpu.memory_space<vmem>>, vector<128x256xbf16>
    %c0_3 = arith.constant 0 : index
    %c256 = arith.constant 256 : index
    %2 = vector.load %arg2[%c0_3, %c256] : memref<128x384xbf16, #tpu.memory_space<vmem>>, vector<128x128xbf16>
    %c0_4 = arith.constant 0 : index
    %c0_5 = arith.constant 0 : index
    %3 = vector.load %arg3[%c0_4, %c0_5] : memref<1x384xf32, #tpu.memory_space<vmem>>, vector<1x384xf32>
    %4 = vector.shape_cast %3 : vector<1x384xf32> to vector<1x384xf32>
    %5 = vector.broadcast %4 : vector<1x384xf32> to vector<2x384xf32>
    %c0_6 = arith.constant 0 : index
    %c0_7 = arith.constant 0 : index
    %6 = vector.load %arg4[%c0_6, %c0_7] : memref<1x128xf32, #tpu.memory_space<vmem>>, vector<1x128xf32>
    %7 = vector.shape_cast %6 : vector<1x128xf32> to vector<1x128xf32>
    %8 = vector.broadcast %7 : vector<1x128xf32> to vector<2x128xf32>
    %cst = arith.constant 0.000000e+00 : f32
    %9 = vector.broadcast %cst : f32 to vector<2x128xf32>
    %c0_8 = arith.constant 0 : index
    %c0_9 = arith.constant 0 : index
    %10 = memref.load %arg0[%c0_8, %c0_9] : memref<8x2xf32, #tpu.memory_space<smem>>
    %11 = vector.broadcast %10 : f32 to vector<1x384xf32>
    %12 = arith.mulf %11, %0 : vector<1x384xf32>
    %c0_10 = arith.constant 0 : index
    %c1 = arith.constant 1 : index
    %13 = memref.load %arg0[%c0_10, %c1] : memref<8x2xf32, #tpu.memory_space<smem>>
    %14 = vector.broadcast %13 : f32 to vector<1x384xf32>
    %15 = arith.mulf %14, %0 : vector<1x384xf32>
    %16 = tpu.concatenate %12, %15 in 0 : vector<1x384xf32>, vector<1x384xf32> -> vector<2x384xf32>
    %17 = arith.addf %16, %5 : vector<2x384xf32>
    %18 = arith.truncf %9 : vector<2x128xf32> to vector<2x128xbf16>
    %cst_11 = arith.constant dense<0.000000e+00> : vector<2x256xf32>
    %19 = tpu.matmul %18, %1, %cst_11 {dimension_numbers = #tpu.dot_dimension_numbers<[1], [0], [0], [1], [0, 0, 1, 1], [], []>} : vector<2x128xbf16>, vector<128x256xbf16>, vector<2x256xf32> -> vector<2x256xf32>
    %cst_12 = arith.constant dense<0.000000e+00> : vector<2x128xf32>
    %20 = tpu.matmul %18, %2, %cst_12 {dimension_numbers = #tpu.dot_dimension_numbers<[1], [0], [0], [1], [0, 0, 1, 1], [], []>} : vector<2x128xbf16>, vector<128x128xbf16>, vector<2x128xf32> -> vector<2x128xf32>
    %21 = vector.extract_strided_slice %17 {offsets = [0, 0], sizes = [2, 256], strides = [1, 1]} : vector<2x384xf32> to vector<2x256xf32>
    %22 = arith.addf %21, %19 : vector<2x256xf32>
    %23 = arith.negf %22 : vector<2x256xf32>
    %24 = math.exp %23 : vector<2x256xf32>
    %cst_13 = arith.constant 1.000000e+00 : f32
    %25 = vector.broadcast %cst_13 : f32 to vector<2x256xf32>
    %26 = arith.addf %25, %24 : vector<2x256xf32>
    %27 = arith.divf %25, %26 : vector<2x256xf32>
    %28 = vector.extract_strided_slice %27 {offsets = [0, 0], sizes = [2, 128], strides = [1, 1]} : vector<2x256xf32> to vector<2x128xf32>
    %29 = vector.extract_strided_slice %27 {offsets = [0, 128], sizes = [2, 128], strides = [1, 1]} : vector<2x256xf32> to vector<2x128xf32>
    %30 = vector.extract_strided_slice %17 {offsets = [0, 256], sizes = [2, 128], strides = [1, 1]} : vector<2x384xf32> to vector<2x128xf32>
    %31 = arith.addf %20, %8 : vector<2x128xf32>
    %32 = arith.mulf %28, %31 : vector<2x128xf32>
    %33 = arith.addf %30, %32 : vector<2x128xf32>
    %34 = math.tanh %33 : vector<2x128xf32>
    %cst_14 = arith.constant 1.000000e+00 : f32
    %35 = vector.broadcast %cst_14 : f32 to vector<2x128xf32>
    %36 = arith.subf %35, %29 : vector<2x128xf32>
    %37 = arith.mulf %36, %34 : vector<2x128xf32>
    %38 = arith.mulf %29, %9 : vector<2x128xf32>
    %39 = arith.addf %37, %38 : vector<2x128xf32>
    %c1_15 = arith.constant 1 : index
    %c0_16 = arith.constant 0 : index
    %40 = memref.load %arg0[%c1_15, %c0_16] : memref<8x2xf32, #tpu.memory_space<smem>>
    %41 = vector.broadcast %40 : f32 to vector<1x384xf32>
    %42 = arith.mulf %41, %0 : vector<1x384xf32>
    %c1_17 = arith.constant 1 : index
    %c1_18 = arith.constant 1 : index
    %43 = memref.load %arg0[%c1_17, %c1_18] : memref<8x2xf32, #tpu.memory_space<smem>>
    %44 = vector.broadcast %43 : f32 to vector<1x384xf32>
    %45 = arith.mulf %44, %0 : vector<1x384xf32>
    %46 = tpu.concatenate %42, %45 in 0 : vector<1x384xf32>, vector<1x384xf32> -> vector<2x384xf32>
    %47 = arith.addf %46, %5 : vector<2x384xf32>
    %48 = arith.truncf %39 : vector<2x128xf32> to vector<2x128xbf16>
    %cst_19 = arith.constant dense<0.000000e+00> : vector<2x256xf32>
    %49 = tpu.matmul %48, %1, %cst_19 {dimension_numbers = #tpu.dot_dimension_numbers<[1], [0], [0], [1], [0, 0, 1, 1], [], []>} : vector<2x128xbf16>, vector<128x256xbf16>, vector<2x256xf32> -> vector<2x256xf32>
    %cst_20 = arith.constant dense<0.000000e+00> : vector<2x128xf32>
    %50 = tpu.matmul %48, %2, %cst_20 {dimension_numbers = #tpu.dot_dimension_numbers<[1], [0], [0], [1], [0, 0, 1, 1], [], []>} : vector<2x128xbf16>, vector<128x128xbf16>, vector<2x128xf32> -> vector<2x128xf32>
    %51 = vector.extract_strided_slice %47 {offsets = [0, 0], sizes = [2, 256], strides = [1, 1]} : vector<2x384xf32> to vector<2x256xf32>
    %52 = arith.addf %51, %49 : vector<2x256xf32>
    %53 = arith.negf %52 : vector<2x256xf32>
    %54 = math.exp %53 : vector<2x256xf32>
    %cst_21 = arith.constant 1.000000e+00 : f32
    %55 = vector.broadcast %cst_21 : f32 to vector<2x256xf32>
    %56 = arith.addf %55, %54 : vector<2x256xf32>
    %57 = arith.divf %55, %56 : vector<2x256xf32>
    %58 = vector.extract_strided_slice %57 {offsets = [0, 0], sizes = [2, 128], strides = [1, 1]} : vector<2x256xf32> to vector<2x128xf32>
    %59 = vector.extract_strided_slice %57 {offsets = [0, 128], sizes = [2, 128], strides = [1, 1]} : vector<2x256xf32> to vector<2x128xf32>
    %60 = vector.extract_strided_slice %47 {offsets = [0, 256], sizes = [2, 128], strides = [1, 1]} : vector<2x384xf32> to vector<2x128xf32>
    %61 = arith.addf %50, %8 : vector<2x128xf32>
    %62 = arith.mulf %58, %61 : vector<2x128xf32>
    %63 = arith.addf %60, %62 : vector<2x128xf32>
    %64 = math.tanh %63 : vector<2x128xf32>
    %cst_22 = arith.constant 1.000000e+00 : f32
    %65 = vector.broadcast %cst_22 : f32 to vector<2x128xf32>
    %66 = arith.subf %65, %59 : vector<2x128xf32>
    %67 = arith.mulf %66, %64 : vector<2x128xf32>
    %68 = arith.mulf %59, %39 : vector<2x128xf32>
    %69 = arith.addf %67, %68 : vector<2x128xf32>
    %c2 = arith.constant 2 : index
    %c0_23 = arith.constant 0 : index
    %70 = memref.load %arg0[%c2, %c0_23] : memref<8x2xf32, #tpu.memory_space<smem>>
    %71 = vector.broadcast %70 : f32 to vector<1x384xf32>
    %72 = arith.mulf %71, %0 : vector<1x384xf32>
    %c2_24 = arith.constant 2 : index
    %c1_25 = arith.constant 1 : index
    %73 = memref.load %arg0[%c2_24, %c1_25] : memref<8x2xf32, #tpu.memory_space<smem>>
    %74 = vector.broadcast %73 : f32 to vector<1x384xf32>
    %75 = arith.mulf %74, %0 : vector<1x384xf32>
    %76 = tpu.concatenate %72, %75 in 0 : vector<1x384xf32>, vector<1x384xf32> -> vector<2x384xf32>
    %77 = arith.addf %76, %5 : vector<2x384xf32>
    %78 = arith.truncf %69 : vector<2x128xf32> to vector<2x128xbf16>
    %cst_26 = arith.constant dense<0.000000e+00> : vector<2x256xf32>
    %79 = tpu.matmul %78, %1, %cst_26 {dimension_numbers = #tpu.dot_dimension_numbers<[1], [0], [0], [1], [0, 0, 1, 1], [], []>} : vector<2x128xbf16>, vector<128x256xbf16>, vector<2x256xf32> -> vector<2x256xf32>
    %cst_27 = arith.constant dense<0.000000e+00> : vector<2x128xf32>
    %80 = tpu.matmul %78, %2, %cst_27 {dimension_numbers = #tpu.dot_dimension_numbers<[1], [0], [0], [1], [0, 0, 1, 1], [], []>} : vector<2x128xbf16>, vector<128x128xbf16>, vector<2x128xf32> -> vector<2x128xf32>
    %81 = vector.extract_strided_slice %77 {offsets = [0, 0], sizes = [2, 256], strides = [1, 1]} : vector<2x384xf32> to vector<2x256xf32>
    %82 = arith.addf %81, %79 : vector<2x256xf32>
    %83 = arith.negf %82 : vector<2x256xf32>
    %84 = math.exp %83 : vector<2x256xf32>
    %cst_28 = arith.constant 1.000000e+00 : f32
    %85 = vector.broadcast %cst_28 : f32 to vector<2x256xf32>
    %86 = arith.addf %85, %84 : vector<2x256xf32>
    %87 = arith.divf %85, %86 : vector<2x256xf32>
    %88 = vector.extract_strided_slice %87 {offsets = [0, 0], sizes = [2, 128], strides = [1, 1]} : vector<2x256xf32> to vector<2x128xf32>
    %89 = vector.extract_strided_slice %87 {offsets = [0, 128], sizes = [2, 128], strides = [1, 1]} : vector<2x256xf32> to vector<2x128xf32>
    %90 = vector.extract_strided_slice %77 {offsets = [0, 256], sizes = [2, 128], strides = [1, 1]} : vector<2x384xf32> to vector<2x128xf32>
    %91 = arith.addf %80, %8 : vector<2x128xf32>
    %92 = arith.mulf %88, %91 : vector<2x128xf32>
    %93 = arith.addf %90, %92 : vector<2x128xf32>
    %94 = math.tanh %93 : vector<2x128xf32>
    %cst_29 = arith.constant 1.000000e+00 : f32
    %95 = vector.broadcast %cst_29 : f32 to vector<2x128xf32>
    %96 = arith.subf %95, %89 : vector<2x128xf32>
    %97 = arith.mulf %96, %94 : vector<2x128xf32>
    %98 = arith.mulf %89, %69 : vector<2x128xf32>
    %99 = arith.addf %97, %98 : vector<2x128xf32>
    %c3 = arith.constant 3 : index
    %c0_30 = arith.constant 0 : index
    %100 = memref.load %arg0[%c3, %c0_30] : memref<8x2xf32, #tpu.memory_space<smem>>
    %101 = vector.broadcast %100 : f32 to vector<1x384xf32>
    %102 = arith.mulf %101, %0 : vector<1x384xf32>
    %c3_31 = arith.constant 3 : index
    %c1_32 = arith.constant 1 : index
    %103 = memref.load %arg0[%c3_31, %c1_32] : memref<8x2xf32, #tpu.memory_space<smem>>
    %104 = vector.broadcast %103 : f32 to vector<1x384xf32>
    %105 = arith.mulf %104, %0 : vector<1x384xf32>
    %106 = tpu.concatenate %102, %105 in 0 : vector<1x384xf32>, vector<1x384xf32> -> vector<2x384xf32>
    %107 = arith.addf %106, %5 : vector<2x384xf32>
    %108 = arith.truncf %99 : vector<2x128xf32> to vector<2x128xbf16>
    %cst_33 = arith.constant dense<0.000000e+00> : vector<2x256xf32>
    %109 = tpu.matmul %108, %1, %cst_33 {dimension_numbers = #tpu.dot_dimension_numbers<[1], [0], [0], [1], [0, 0, 1, 1], [], []>} : vector<2x128xbf16>, vector<128x256xbf16>, vector<2x256xf32> -> vector<2x256xf32>
    %cst_34 = arith.constant dense<0.000000e+00> : vector<2x128xf32>
    %110 = tpu.matmul %108, %2, %cst_34 {dimension_numbers = #tpu.dot_dimension_numbers<[1], [0], [0], [1], [0, 0, 1, 1], [], []>} : vector<2x128xbf16>, vector<128x128xbf16>, vector<2x128xf32> -> vector<2x128xf32>
    %111 = vector.extract_strided_slice %107 {offsets = [0, 0], sizes = [2, 256], strides = [1, 1]} : vector<2x384xf32> to vector<2x256xf32>
    %112 = arith.addf %111, %109 : vector<2x256xf32>
    %113 = arith.negf %112 : vector<2x256xf32>
    %114 = math.exp %113 : vector<2x256xf32>
    %cst_35 = arith.constant 1.000000e+00 : f32
    %115 = vector.broadcast %cst_35 : f32 to vector<2x256xf32>
    %116 = arith.addf %115, %114 : vector<2x256xf32>
    %117 = arith.divf %115, %116 : vector<2x256xf32>
    %118 = vector.extract_strided_slice %117 {offsets = [0, 0], sizes = [2, 128], strides = [1, 1]} : vector<2x256xf32> to vector<2x128xf32>
    %119 = vector.extract_strided_slice %117 {offsets = [0, 128], sizes = [2, 128], strides = [1, 1]} : vector<2x256xf32> to vector<2x128xf32>
    %120 = vector.extract_strided_slice %107 {offsets = [0, 256], sizes = [2, 128], strides = [1, 1]} : vector<2x384xf32> to vector<2x128xf32>
    %121 = arith.addf %110, %8 : vector<2x128xf32>
    %122 = arith.mulf %118, %121 : vector<2x128xf32>
    %123 = arith.addf %120, %122 : vector<2x128xf32>
    %124 = math.tanh %123 : vector<2x128xf32>
    %cst_36 = arith.constant 1.000000e+00 : f32
    %125 = vector.broadcast %cst_36 : f32 to vector<2x128xf32>
    %126 = arith.subf %125, %119 : vector<2x128xf32>
    %127 = arith.mulf %126, %124 : vector<2x128xf32>
    %128 = arith.mulf %119, %99 : vector<2x128xf32>
    %129 = arith.addf %127, %128 : vector<2x128xf32>
    %c4 = arith.constant 4 : index
    %c0_37 = arith.constant 0 : index
    %130 = memref.load %arg0[%c4, %c0_37] : memref<8x2xf32, #tpu.memory_space<smem>>
    %131 = vector.broadcast %130 : f32 to vector<1x384xf32>
    %132 = arith.mulf %131, %0 : vector<1x384xf32>
    %c4_38 = arith.constant 4 : index
    %c1_39 = arith.constant 1 : index
    %133 = memref.load %arg0[%c4_38, %c1_39] : memref<8x2xf32, #tpu.memory_space<smem>>
    %134 = vector.broadcast %133 : f32 to vector<1x384xf32>
    %135 = arith.mulf %134, %0 : vector<1x384xf32>
    %136 = tpu.concatenate %132, %135 in 0 : vector<1x384xf32>, vector<1x384xf32> -> vector<2x384xf32>
    %137 = arith.addf %136, %5 : vector<2x384xf32>
    %138 = arith.truncf %129 : vector<2x128xf32> to vector<2x128xbf16>
    %cst_40 = arith.constant dense<0.000000e+00> : vector<2x256xf32>
    %139 = tpu.matmul %138, %1, %cst_40 {dimension_numbers = #tpu.dot_dimension_numbers<[1], [0], [0], [1], [0, 0, 1, 1], [], []>} : vector<2x128xbf16>, vector<128x256xbf16>, vector<2x256xf32> -> vector<2x256xf32>
    %cst_41 = arith.constant dense<0.000000e+00> : vector<2x128xf32>
    %140 = tpu.matmul %138, %2, %cst_41 {dimension_numbers = #tpu.dot_dimension_numbers<[1], [0], [0], [1], [0, 0, 1, 1], [], []>} : vector<2x128xbf16>, vector<128x128xbf16>, vector<2x128xf32> -> vector<2x128xf32>
    %141 = vector.extract_strided_slice %137 {offsets = [0, 0], sizes = [2, 256], strides = [1, 1]} : vector<2x384xf32> to vector<2x256xf32>
    %142 = arith.addf %141, %139 : vector<2x256xf32>
    %143 = arith.negf %142 : vector<2x256xf32>
    %144 = math.exp %143 : vector<2x256xf32>
    %cst_42 = arith.constant 1.000000e+00 : f32
    %145 = vector.broadcast %cst_42 : f32 to vector<2x256xf32>
    %146 = arith.addf %145, %144 : vector<2x256xf32>
    %147 = arith.divf %145, %146 : vector<2x256xf32>
    %148 = vector.extract_strided_slice %147 {offsets = [0, 0], sizes = [2, 128], strides = [1, 1]} : vector<2x256xf32> to vector<2x128xf32>
    %149 = vector.extract_strided_slice %147 {offsets = [0, 128], sizes = [2, 128], strides = [1, 1]} : vector<2x256xf32> to vector<2x128xf32>
    %150 = vector.extract_strided_slice %137 {offsets = [0, 256], sizes = [2, 128], strides = [1, 1]} : vector<2x384xf32> to vector<2x128xf32>
    %151 = arith.addf %140, %8 : vector<2x128xf32>
    %152 = arith.mulf %148, %151 : vector<2x128xf32>
    %153 = arith.addf %150, %152 : vector<2x128xf32>
    %154 = math.tanh %153 : vector<2x128xf32>
    %cst_43 = arith.constant 1.000000e+00 : f32
    %155 = vector.broadcast %cst_43 : f32 to vector<2x128xf32>
    %156 = arith.subf %155, %149 : vector<2x128xf32>
    %157 = arith.mulf %156, %154 : vector<2x128xf32>
    %158 = arith.mulf %149, %129 : vector<2x128xf32>
    %159 = arith.addf %157, %158 : vector<2x128xf32>
    %c5 = arith.constant 5 : index
    %c0_44 = arith.constant 0 : index
    %160 = memref.load %arg0[%c5, %c0_44] : memref<8x2xf32, #tpu.memory_space<smem>>
    %161 = vector.broadcast %160 : f32 to vector<1x384xf32>
    %162 = arith.mulf %161, %0 : vector<1x384xf32>
    %c5_45 = arith.constant 5 : index
    %c1_46 = arith.constant 1 : index
    %163 = memref.load %arg0[%c5_45, %c1_46] : memref<8x2xf32, #tpu.memory_space<smem>>
    %164 = vector.broadcast %163 : f32 to vector<1x384xf32>
    %165 = arith.mulf %164, %0 : vector<1x384xf32>
    %166 = tpu.concatenate %162, %165 in 0 : vector<1x384xf32>, vector<1x384xf32> -> vector<2x384xf32>
    %167 = arith.addf %166, %5 : vector<2x384xf32>
    %168 = arith.truncf %159 : vector<2x128xf32> to vector<2x128xbf16>
    %cst_47 = arith.constant dense<0.000000e+00> : vector<2x256xf32>
    %169 = tpu.matmul %168, %1, %cst_47 {dimension_numbers = #tpu.dot_dimension_numbers<[1], [0], [0], [1], [0, 0, 1, 1], [], []>} : vector<2x128xbf16>, vector<128x256xbf16>, vector<2x256xf32> -> vector<2x256xf32>
    %cst_48 = arith.constant dense<0.000000e+00> : vector<2x128xf32>
    %170 = tpu.matmul %168, %2, %cst_48 {dimension_numbers = #tpu.dot_dimension_numbers<[1], [0], [0], [1], [0, 0, 1, 1], [], []>} : vector<2x128xbf16>, vector<128x128xbf16>, vector<2x128xf32> -> vector<2x128xf32>
    %171 = vector.extract_strided_slice %167 {offsets = [0, 0], sizes = [2, 256], strides = [1, 1]} : vector<2x384xf32> to vector<2x256xf32>
    %172 = arith.addf %171, %169 : vector<2x256xf32>
    %173 = arith.negf %172 : vector<2x256xf32>
    %174 = math.exp %173 : vector<2x256xf32>
    %cst_49 = arith.constant 1.000000e+00 : f32
    %175 = vector.broadcast %cst_49 : f32 to vector<2x256xf32>
    %176 = arith.addf %175, %174 : vector<2x256xf32>
    %177 = arith.divf %175, %176 : vector<2x256xf32>
    %178 = vector.extract_strided_slice %177 {offsets = [0, 0], sizes = [2, 128], strides = [1, 1]} : vector<2x256xf32> to vector<2x128xf32>
    %179 = vector.extract_strided_slice %177 {offsets = [0, 128], sizes = [2, 128], strides = [1, 1]} : vector<2x256xf32> to vector<2x128xf32>
    %180 = vector.extract_strided_slice %167 {offsets = [0, 256], sizes = [2, 128], strides = [1, 1]} : vector<2x384xf32> to vector<2x128xf32>
    %181 = arith.addf %170, %8 : vector<2x128xf32>
    %182 = arith.mulf %178, %181 : vector<2x128xf32>
    %183 = arith.addf %180, %182 : vector<2x128xf32>
    %184 = math.tanh %183 : vector<2x128xf32>
    %cst_50 = arith.constant 1.000000e+00 : f32
    %185 = vector.broadcast %cst_50 : f32 to vector<2x128xf32>
    %186 = arith.subf %185, %179 : vector<2x128xf32>
    %187 = arith.mulf %186, %184 : vector<2x128xf32>
    %188 = arith.mulf %179, %159 : vector<2x128xf32>
    %189 = arith.addf %187, %188 : vector<2x128xf32>
    %c6 = arith.constant 6 : index
    %c0_51 = arith.constant 0 : index
    %190 = memref.load %arg0[%c6, %c0_51] : memref<8x2xf32, #tpu.memory_space<smem>>
    %191 = vector.broadcast %190 : f32 to vector<1x384xf32>
    %192 = arith.mulf %191, %0 : vector<1x384xf32>
    %c6_52 = arith.constant 6 : index
    %c1_53 = arith.constant 1 : index
    %193 = memref.load %arg0[%c6_52, %c1_53] : memref<8x2xf32, #tpu.memory_space<smem>>
    %194 = vector.broadcast %193 : f32 to vector<1x384xf32>
    %195 = arith.mulf %194, %0 : vector<1x384xf32>
    %196 = tpu.concatenate %192, %195 in 0 : vector<1x384xf32>, vector<1x384xf32> -> vector<2x384xf32>
    %197 = arith.addf %196, %5 : vector<2x384xf32>
    %198 = arith.truncf %189 : vector<2x128xf32> to vector<2x128xbf16>
    %cst_54 = arith.constant dense<0.000000e+00> : vector<2x256xf32>
    %199 = tpu.matmul %198, %1, %cst_54 {dimension_numbers = #tpu.dot_dimension_numbers<[1], [0], [0], [1], [0, 0, 1, 1], [], []>} : vector<2x128xbf16>, vector<128x256xbf16>, vector<2x256xf32> -> vector<2x256xf32>
    %cst_55 = arith.constant dense<0.000000e+00> : vector<2x128xf32>
    %200 = tpu.matmul %198, %2, %cst_55 {dimension_numbers = #tpu.dot_dimension_numbers<[1], [0], [0], [1], [0, 0, 1, 1], [], []>} : vector<2x128xbf16>, vector<128x128xbf16>, vector<2x128xf32> -> vector<2x128xf32>
    %201 = vector.extract_strided_slice %197 {offsets = [0, 0], sizes = [2, 256], strides = [1, 1]} : vector<2x384xf32> to vector<2x256xf32>
    %202 = arith.addf %201, %199 : vector<2x256xf32>
    %203 = arith.negf %202 : vector<2x256xf32>
    %204 = math.exp %203 : vector<2x256xf32>
    %cst_56 = arith.constant 1.000000e+00 : f32
    %205 = vector.broadcast %cst_56 : f32 to vector<2x256xf32>
    %206 = arith.addf %205, %204 : vector<2x256xf32>
    %207 = arith.divf %205, %206 : vector<2x256xf32>
    %208 = vector.extract_strided_slice %207 {offsets = [0, 0], sizes = [2, 128], strides = [1, 1]} : vector<2x256xf32> to vector<2x128xf32>
    %209 = vector.extract_strided_slice %207 {offsets = [0, 128], sizes = [2, 128], strides = [1, 1]} : vector<2x256xf32> to vector<2x128xf32>
    %210 = vector.extract_strided_slice %197 {offsets = [0, 256], sizes = [2, 128], strides = [1, 1]} : vector<2x384xf32> to vector<2x128xf32>
    %211 = arith.addf %200, %8 : vector<2x128xf32>
    %212 = arith.mulf %208, %211 : vector<2x128xf32>
    %213 = arith.addf %210, %212 : vector<2x128xf32>
    %214 = math.tanh %213 : vector<2x128xf32>
    %cst_57 = arith.constant 1.000000e+00 : f32
    %215 = vector.broadcast %cst_57 : f32 to vector<2x128xf32>
    %216 = arith.subf %215, %209 : vector<2x128xf32>
    %217 = arith.mulf %216, %214 : vector<2x128xf32>
    %218 = arith.mulf %209, %189 : vector<2x128xf32>
    %219 = arith.addf %217, %218 : vector<2x128xf32>
    %c7 = arith.constant 7 : index
    %c0_58 = arith.constant 0 : index
    %220 = memref.load %arg0[%c7, %c0_58] : memref<8x2xf32, #tpu.memory_space<smem>>
    %221 = vector.broadcast %220 : f32 to vector<1x384xf32>
    %222 = arith.mulf %221, %0 : vector<1x384xf32>
    %c7_59 = arith.constant 7 : index
    %c1_60 = arith.constant 1 : index
    %223 = memref.load %arg0[%c7_59, %c1_60] : memref<8x2xf32, #tpu.memory_space<smem>>
    %224 = vector.broadcast %223 : f32 to vector<1x384xf32>
    %225 = arith.mulf %224, %0 : vector<1x384xf32>
    %226 = tpu.concatenate %222, %225 in 0 : vector<1x384xf32>, vector<1x384xf32> -> vector<2x384xf32>
    %227 = arith.addf %226, %5 : vector<2x384xf32>
    %228 = arith.truncf %219 : vector<2x128xf32> to vector<2x128xbf16>
    %cst_61 = arith.constant dense<0.000000e+00> : vector<2x256xf32>
    %229 = tpu.matmul %228, %1, %cst_61 {dimension_numbers = #tpu.dot_dimension_numbers<[1], [0], [0], [1], [0, 0, 1, 1], [], []>} : vector<2x128xbf16>, vector<128x256xbf16>, vector<2x256xf32> -> vector<2x256xf32>
    %cst_62 = arith.constant dense<0.000000e+00> : vector<2x128xf32>
    %230 = tpu.matmul %228, %2, %cst_62 {dimension_numbers = #tpu.dot_dimension_numbers<[1], [0], [0], [1], [0, 0, 1, 1], [], []>} : vector<2x128xbf16>, vector<128x128xbf16>, vector<2x128xf32> -> vector<2x128xf32>
    %231 = vector.extract_strided_slice %227 {offsets = [0, 0], sizes = [2, 256], strides = [1, 1]} : vector<2x384xf32> to vector<2x256xf32>
    %232 = arith.addf %231, %229 : vector<2x256xf32>
    %233 = arith.negf %232 : vector<2x256xf32>
    %234 = math.exp %233 : vector<2x256xf32>
    %cst_63 = arith.constant 1.000000e+00 : f32
    %235 = vector.broadcast %cst_63 : f32 to vector<2x256xf32>
    %236 = arith.addf %235, %234 : vector<2x256xf32>
    %237 = arith.divf %235, %236 : vector<2x256xf32>
    %238 = vector.extract_strided_slice %237 {offsets = [0, 0], sizes = [2, 128], strides = [1, 1]} : vector<2x256xf32> to vector<2x128xf32>
    %239 = vector.extract_strided_slice %237 {offsets = [0, 128], sizes = [2, 128], strides = [1, 1]} : vector<2x256xf32> to vector<2x128xf32>
    %240 = vector.extract_strided_slice %227 {offsets = [0, 256], sizes = [2, 128], strides = [1, 1]} : vector<2x384xf32> to vector<2x128xf32>
    %241 = arith.addf %230, %8 : vector<2x128xf32>
    %242 = arith.mulf %238, %241 : vector<2x128xf32>
    %243 = arith.addf %240, %242 : vector<2x128xf32>
    %244 = math.tanh %243 : vector<2x128xf32>
    %cst_64 = arith.constant 1.000000e+00 : f32
    %245 = vector.broadcast %cst_64 : f32 to vector<2x128xf32>
    %246 = arith.subf %245, %239 : vector<2x128xf32>
    %247 = arith.mulf %246, %244 : vector<2x128xf32>
    %248 = arith.mulf %239, %219 : vector<2x128xf32>
    %249 = arith.addf %247, %248 : vector<2x128xf32>
    %c0_65 = arith.constant 0 : index
    %c0_66 = arith.constant 0 : index
    %250 = vector.load %arg5[%c0_65, %c0_66] : memref<128x128xf32, #tpu.memory_space<vmem>>, vector<128x128xf32>
    %cst_67 = arith.constant dense<0.000000e+00> : vector<2x128xf32>
    %251 = tpu.matmul %249, %250, %cst_67 {dimension_numbers = #tpu.dot_dimension_numbers<[1], [0], [0], [1], [0, 0, 1, 1], [], []>} : vector<2x128xf32>, vector<128x128xf32>, vector<2x128xf32> -> vector<2x128xf32>
    %c0_68 = arith.constant 0 : index
    %c0_69 = arith.constant 0 : index
    %252 = vector.load %arg6[%c0_68, %c0_69] : memref<1x128xf32, #tpu.memory_space<vmem>>, vector<1x128xf32>
    %253 = vector.broadcast %252 : vector<1x128xf32> to vector<2x128xf32>
    %254 = arith.addf %251, %253 : vector<2x128xf32>
    %c0_70 = arith.constant 0 : index
    %c0_71 = arith.constant 0 : index
    %255 = vector.load %arg7[%c0_70, %c0_71] : memref<2x128xf32, #tpu.memory_space<vmem>>, vector<2x128xf32>
    tpu.vector_store %arg7[%c0_70, %c0_71], %254 {strides = array<i32>} : memref<2x128xf32, #tpu.memory_space<vmem>>, vector<2x128xf32>,
    return
  }
}

</mosaic_0001>

<bundles_post_ra>
// kernel: tpu_custom_call.1
= control target key start
LH: loop header
LB: loop body
LE: loop exit
PB: predicated region body
PF: predicated region fallthrough
CT: control target
= control target key end

     0   :  { %12 = vsyncpa [#allocation5], 0  ;;  %s2761_s0 = inlined_call_operand.vmem [shape: f32[8,2], index: 0, kind: input, shape index: {}]   ;;  %s2762_s1 = inlined_call_operand.vmem [shape: f32[1,384], index: 1, kind: input, shape index: {}]   ;;  %s2763_s2 = inlined_call_operand.hbm [shape: bf16[128,384], index: 2, kind: input, shape index: {}]   ;;  %s2764_s3 = inlined_call_operand.vmem [shape: f32[1,384], index: 3, kind: input, shape index: {}]   ;;  %s2765_s4 = inlined_call_operand.vmem [shape: f32[1,128], index: 4, kind: input, shape index: {}]   ;;  %s2766_s5 = inlined_call_operand.hbm [shape: f32[128,128], index: 5, kind: input, shape index: {}]   ;;  %s2767_s6 = inlined_call_operand.vmem [shape: f32[1,128], index: 6, kind: input, shape index: {}]   ;;  %s2768_s7 = inlined_call_operand.hbm [shape: f32[2,128], index: 7, kind: output, shape index: {}]  }
   0x1   :  { %13 = vsyncpa [#allocation3], 0 }
   0x2   :  { %14 = vsyncpa [#allocation8], 0 }
   0x3   :  { %15 = vsyncpa [#allocation4], 0  ;;  %s22_s26 = sshll.u32 %s2761_s0, 4  ;;  %s23_s26 = int_to_ptr.vmem [resolvable:$true] %s22_s26 }
   0x4   :  { %s2056_s27 = scalar_lea.vmem %s23_s26, 128  ;;  %p2061_p1 = scmp.lt.s32.totalorder %s23_s26, %s23_s26 }
   0x5   :  { %p2057_p0 = scmp.ne.s32.totalorder %s23_s26, %s2056_s27  ;;  %p2062_p2 = scmp.lt.s32.totalorder %s2056_s27, %s2056_s27 }
   0x7   :  { %p2063_p3 = por %p2062_p2, %p2061_p1 }
   0x9   :  { %p2064_p4 = pnand %p2063_p3, %p2057_p0 }
   0xb   :  { %2067 = shalt.err (!%p2064_p4)
}
   0xc   :  { %s2142_s28 = smov [#allocation2]   ;;  %s2143_s29 = smov [#allocation6]  }
   0xd   :  { %25 = dma.vmem_to_smem %s23_s26, 128, %s2142_s28, [#allocation5]  }
   0xe   :  { %s33_s30 = sshll.u32 %s2143_s29, 4  ;;  %s2068_s10 = scalar_lea.hbm %s2763_s2, 3072  ;;  %s34_s30 = int_to_ptr.vmem [resolvable:$true] %s33_s30 }
   0xf   :  { %p2069_p5 = scmp.ne.s32.totalorder %s2763_s2, %s2068_s10  ;;  %p2072_p6 = scmp.lt.u32.totalorder %s2068_s10, %s2763_s2 }
  0x11   :  { %p2074_p7 = pnand %p2072_p6, %p2069_p5 }
  0x13   :  { %2077 = shalt.err (!%p2074_p7)
}
  0x14   :  { %s2078_s14 = scalar_lea.vmem %s34_s30, 3072  ;;  %p2083_p9 = scmp.lt.s32.totalorder %s34_s30, %s34_s30 }
  0x15   :  { %p2079_p8 = scmp.ne.s32.totalorder %s34_s30, %s2078_s14  ;;  %p2084_p10 = scmp.lt.s32.totalorder %s2078_s14, %s2078_s14 }
  0x17   :  { %p2085_p11 = por %p2084_p10, %p2083_p9 }
  0x19   :  { %p2086_p12 = pnand %p2085_p11, %p2079_p8 }
  0x1b   :  { %2089 = shalt.err (!%p2086_p12)
}
  0x1c   :  { %s2144_s15 = smov 192   ;;  %s2145_s16 = smov 12  }
  0x1d   :  { %39 = dma.hbm_to_vmem [thread:$0]  %s2763_s2, 3072, %s34_s30, [#allocation3], %s2144_s15, %s2144_s15, %s2145_s16  }
  0x1e   :  { %s2146_s19 = smov [#allocation7]   ;;  %s2090_s23 = scalar_lea.hbm %s2766_s5, 2048 }
  0x1f   :  { %s49_s20 = sshll.u32 %s2146_s19, 4  ;;  %p2091_p13 = scmp.ne.s32.totalorder %s2766_s5, %s2090_s23  ;;  %s50_s20 = int_to_ptr.vmem [resolvable:$true] %s49_s20 }
  0x20   :  { %p2094_p0 = scmp.lt.u32.totalorder %s2090_s23, %s2766_s5 }
  0x22   :  { %p2096_p1 = pnand %p2094_p0, %p2091_p13 }
  0x24   :  { %2099 = shalt.err (!%p2096_p1)
}
  0x25   :  { %s2100_s28 = scalar_lea.vmem %s50_s20, 2048  ;;  %p2105_p3 = scmp.lt.s32.totalorder %s50_s20, %s50_s20 }
  0x26   :  { %p2101_p2 = scmp.ne.s32.totalorder %s50_s20, %s2100_s28  ;;  %p2106_p4 = scmp.lt.s32.totalorder %s2100_s28, %s2100_s28 }
  0x28   :  { %p2107_p5 = por %p2106_p4, %p2105_p3 }
  0x2a   :  { %p2108_p6 = pnand %p2107_p5, %p2101_p2 }
  0x2c   :  { %2111 = shalt.err (!%p2108_p6)
}
  0x2d   :  { %s2147_s2 = smov 128   ;;  %s2148_s29 = smov 8  }
  0x2e   :  { %55 = dma.hbm_to_vmem [thread:$0]  %s2766_s5, 2048, %s50_s20, [#allocation8], %s2147_s2, %s2147_s2, %s2148_s29  }
  0x2f   :  { %2134 = dma.done.wait [#allocation5], 128  }
  0x30   :  { %2135 = vsyncadd [#allocation5], 4294967168 }
  0x31   :  { %2136 = dma.done.wait [#allocation3], 3072  }
  0x32   :  { %2137 = vsyncadd [#allocation3], 4294964224 }
  0x33   :  { %2138 = dma.done.wait [#allocation8], 2048  }
  0x34   :  { %2139 = vsyncadd [#allocation8], 4294965248 }
  0x35   :  { %67 = sfence }
  0x36   :  { %v2221_v0 = vld [vmem:[#allocation6 + $0x4] ss:$12 sps:$4 sm:$0xff]   ;;  %v2223_v1 = vld [vmem:[#allocation6] ss:$12 sps:$4 sm:$0xff]   ;;  %v2149_v2 = vmov 0.0   ;;  %v2150_v3 = vmov 0   ;;  %v104_v26 = vlaneseq }
  0x37   :  { %1687 = vmatprep.subr.bf16.mxu1 %v2149_v2  ;;  %283 = vmatprep.mubr.bf16.mxu0 %v2150_v3  ;;  %v2228_v4 = vld [vmem:[#allocation6 + $0x1c] ss:$12 sps:$4 sm:$0xff]   ;;  %vm2151_vm0 = vmmov 0   ;;  %v2233_v5 = vld [vmem:[#allocation6 + $0x18] ss:$12 sps:$4 sm:$0xff]   ;;  %s126_s5 = sld [smem:[#allocation2]] }
  0x38   :  { %251 = vmatprep.subr.bf16.mxu0 %v2221_v0  ;;  %1703 = vmatprep.mubr.msk.bf16.mxu1 %vm2151_vm0, %v2149_v2  ;;  %v2236_v6 = vld [vmem:[#allocation6 + $0x34] ss:$12 sps:$4 sm:$0xff]   ;;  %v2239_v7 = vld [vmem:[#allocation6 + $0x30] ss:$12 sps:$4 sm:$0xff]   ;;  %v2242_v8 = vld [vmem:[#allocation6 + $0x4c] ss:$12 sps:$4 sm:$0xff]  }
  0x39   :  { %252 = vmatpush1.bf16.msra.mxu0 %v2223_v1  ;;  %v2244_v9 = vld [vmem:[#allocation6 + $0x8] ss:$12 sps:$4 sm:$0xff]   ;;  %v2251_v11 = vld [vmem:[#allocation6 + $0x64] ss:$12 sps:$4 sm:$0xff]   ;;  %v2254_v12 = vld [vmem:[#allocation6 + $0x20] ss:$12 sps:$4 sm:$0xff]  }
  0x3a   :  { %253 = vmatprep.subr.bf16.mxu0 %v2228_v4  ;;  %v2247_v10 = vld [vmem:[#allocation6 + $0x48] ss:$12 sps:$4 sm:$0xff]   ;;  %1688 = vmatpush3.bf16.msra.mxu1 %v2244_v9  ;;  %v2256_v13 = vld [vmem:[#allocation6 + $0x60] ss:$12 sps:$4 sm:$0xff]   ;;  %v2260_v14 = vld [vmem:[#allocation6 + $0x38] ss:$12 sps:$4 sm:$0xff]  }
  0x3b   :  { %1689 = vmatprep.subr.bf16.mxu1 %v2149_v2  ;;  %v2263_v15 = vld [vmem:[#allocation6 + $0x7c] ss:$12 sps:$4 sm:$0xff]   ;;  %v2267_v16 = vld [vmem:[#allocation6 + $0x78] ss:$12 sps:$4 sm:$0xff]   ;;  %v2273_v18 = vld [vmem:[#allocation6 + $0x94] ss:$12 sps:$4 sm:$0xff]  }
  0x3c   :  { %v2270_v17 = vld [vmem:[#allocation6 + $0x50] ss:$12 sps:$4 sm:$0xff]   ;;  %v2280_v20 = vld [vmem:[#allocation6 + $0x68] ss:$12 sps:$4 sm:$0xff]   ;;  %v2283_v21 = vld [vmem:[#allocation6 + $0xac] ss:$12 sps:$4 sm:$0xff]  }
  0x3d   :  { %254 = vmatpush1.bf16.msra.mxu0 %v2233_v5  ;;  %v2277_v19 = vld [vmem:[#allocation6 + $0x90] ss:$12 sps:$4 sm:$0xff]   ;;  %v2287_v22 = vld [vmem:[#allocation6 + $0xa8] ss:$12 sps:$4 sm:$0xff]   ;;  %v2290_v23 = vld [vmem:[#allocation6 + $0x80] ss:$12 sps:$4 sm:$0xff]   ;;  %v127_v29 = vstv %s126_s5 }
  0x3e   :  { %255 = vmatprep.subr.bf16.mxu0 %v2236_v6  ;;  %1690 = vmatpush3.bf16.msra.mxu1 %v2254_v12  ;;  %v2296_v24 = vld [vmem:[#allocation6 + $0x98] ss:$12 sps:$4 sm:$0xff]   ;;  %v2302_v25 = vld [vmem:[#allocation6 + $0xb0] ss:$12 sps:$4 sm:$0xff]   ;;  %s1542_s9 = sld [smem:[#allocation2 + $0x1]]  ;;  %v105_v27 = vshrl.u32 %v104_v26, 7 }
  0x3f   :  { %1691 = vmatprep.subr.bf16.mxu1 %v2149_v2  ;;  %v2346_v28 = vld [vmem:[%s2762_s1] sm:$0x7]  ;;  %vm164_vm1 = vcmask 1040384   ;;  %s1569_s14 = sld [smem:[#allocation2 + $0x80]]  ;;  %s1570_s15 = sld [smem:[#allocation2 + $0x81]] }
  0x40   :  { %v2348_v31 = vsub.s32 0, %v105_v27  ;;  %v128_v32 = vmul.f32 %v127_v29, %v2346_v28  ;;  %v2352_v34 = vsub.s32 1, %v105_v27  ;;  %v102_v35 = vld [vmem:[%s2764_s3] sm:$0x7]  ;;  %v2371_v60 = vsub.s32 2, %v105_v27  ;;  %s1573_s16 = sld [smem:[#allocation2 + $0x100]] }
  0x41   :  { %256 = vmatpush1.bf16.msra.mxu0 %v2239_v7  ;;  %v2378_v26 = vld [vmem:[%s2765_s4] ss:$0 sm:$0xff]  ;;  %s1574_s17 = sld [smem:[#allocation2 + $0x101]]  ;;  %s1577_s18 = sld [smem:[#allocation2 + $0x180]] }
  0x42   :  { %257 = vmatprep.subr.bf16.mxu0 %v2242_v8  ;;  %1692 = vmatpush3.bf16.msra.mxu1 %v2260_v14  ;;  %v136_v36 = vrot.slane %v128_v32, %v2348_v31  ;;  %v2360_v38 = vrot.slane %v102_v35, %v2348_v31  ;;  %v140_v39 = vrot.slane %v128_v32, %v2352_v34  ;;  %s1578_s19 = sld [smem:[#allocation2 + $0x181]]  ;;  %s1581_s20 = sld [smem:[#allocation2 + $0x200]] }
  0x43   :  { %1693 = vmatprep.subr.bf16.mxu1 %v2149_v2  ;;  %v2366_v42 = vrot.slane %v102_v35, %v2352_v34  ;;  %v144_v61 = vrot.slane %v128_v32, %v2371_v60  ;;  %v2381_v29 = vrot.slane %v102_v35, %v2371_v60  ;;  %s1582_s21 = sld [smem:[#allocation2 + $0x201]]  ;;  %s1585_s22 = sld [smem:[#allocation2 + $0x280]] }
  0x44   :  { %v130_v30 = vstv %s1542_s9  ;;  %s1586_s23 = sld [smem:[#allocation2 + $0x281]]  ;;  %s1589_s24 = sld [smem:[#allocation2 + $0x300]] }
  0x45   :  { %258 = vmatpush1.bf16.msra.mxu0 %v2247_v10  ;;  %v131_v33 = vmul.f32 %v130_v30, %v2346_v28  ;;  %s1590_s25 = sld [smem:[#allocation2 + $0x301]]  ;;  %s2153_s8 = smov [#allocation9]  }
  0x46   :  { %259 = vmatprep.subr.bf16.mxu0 %v2251_v11  ;;  %1694 = vmatpush3.bf16.msra.mxu1 %v2270_v17  ;;  %s1594_s2 = sld [smem:[#allocation2 + $0x381]]  ;;  %s1530_s5 = sshll.u32 %s2153_s8, 4  ;;  %s1531_s5 = int_to_ptr.vmem [resolvable:$true] %s1530_s5 }
  0x47   :  { %1695 = vmatprep.subr.bf16.mxu1 %v2149_v2  ;;  %v152_v37 = vrot.slane %v131_v33, %v2348_v31  ;;  %v156_v40 = vrot.slane %v131_v33, %v2352_v34  ;;  %v160_v62 = vrot.slane %v131_v33, %v2371_v60  ;;  %s2112_s9 = scalar_lea.vmem %s1531_s5, 32  ;;  %p2117_p8 = scmp.lt.s32.totalorder %s1531_s5, %s1531_s5 }
  0x48   :  { %p2113_p7 = scmp.ne.s32.totalorder %s1531_s5, %s2112_s9  ;;  %p2118_p9 = scmp.lt.s32.totalorder %s2112_s9, %s2112_s9 }
  0x49   :  { %260 = vmatpush1.bf16.msra.mxu0 %v2256_v13  ;;  %v165_v41 = vsel %vm164_vm1, %v136_v36, %v152_v37  ;;  %v166_v44 = vsel %vm164_vm1, %v140_v39, %v156_v40  ;;  %v167_v30 = vsel %vm164_vm1, %v144_v61, %v160_v62 }
  0x4a   :  { %261 = vmatprep.subr.bf16.mxu0 %v2263_v15  ;;  %1696 = vmatpush3.bf16.msra.mxu1 %v2280_v20  ;;  %v168_v43 = vadd.f32 %v165_v41, %v2360_v38  ;;  %v169_v46 = vadd.f32 %v166_v44, %v2366_v42  ;;  %v170_v37 = vadd.f32 %v167_v30, %v2381_v29  ;;  %p2119_p10 = por %p2118_p9, %p2117_p8 }
  0x4b   :  { %1697 = vmatprep.subr.bf16.mxu1 %v2149_v2 }
  0x4c   :  { %p2120_p11 = pnand %p2119_p10, %p2113_p7 }
  0x4d   :  { %262 = vmatpush1.bf16.msra.mxu0 %v2267_v16 }
  0x4e   :  { %263 = vmatprep.subr.bf16.mxu0 %v2273_v18  ;;  %1698 = vmatpush3.bf16.msra.mxu1 %v2290_v23 }
  0x4f   :  { %1699 = vmatprep.subr.bf16.mxu1 %v2149_v2 }
  0x51   :  { %264 = vmatpush1.bf16.msra.mxu0 %v2277_v19 }
  0x52   :  { %265 = vmatprep.subr.bf16.mxu0 %v2283_v21  ;;  %1700 = vmatpush3.bf16.msra.mxu1 %v2296_v24 }
  0x53   :  { %1701 = vmatprep.subr.bf16.mxu1 %v2149_v2 }
  0x55   :  { %266 = vmatpush1.bf16.msra.mxu0 %v2287_v22 }
  0x56   :  { %446 = vmatprep.subr.bf16.mxu0 %v2221_v0  ;;  %1702 = vmatpush3.bf16.msra.mxu1 %v2302_v25 }
  0x57   :  { %1707 = vmatprep.subr.bf16.mxu1 %v2149_v2 }
  0x58   :  { %284 = vmatmul.mubr.bf16.vlgmr.msra.gmra.mrb[0].mxu0 %v2150_v3 }
  0x59   :  { %447 = vmatpush1.bf16.msra.mxu0 %v2223_v1  ;;  %478 = vmatprep.mubr.bf16.mxu0 %v2150_v3 }
  0x5a   :  { %448 = vmatprep.subr.bf16.mxu0 %v2228_v4  ;;  %1704 = vmatmul.mubr.bf16.vlgmr.msra.gmra.mrb[0].mxu1 %v2150_v3 }
  0x5b   :  { %1708 = vmatpush3.bf16.msra.mxu1 %v2244_v9  ;;  %1723 = vmatprep.mubr.msk.bf16.mxu1 %vm2151_vm0, %v2149_v2 }
  0x5c   :  { %1709 = vmatprep.subr.bf16.mxu1 %v2149_v2 }
  0x5d   :  { %449 = vmatpush1.bf16.msra.mxu0 %v2233_v5 }
  0x5e   :  { %450 = vmatprep.subr.bf16.mxu0 %v2236_v6 }
  0x5f   :  { %1710 = vmatpush3.bf16.msra.mxu1 %v2254_v12 }
  0x60   :  { %1711 = vmatprep.subr.bf16.mxu1 %v2149_v2 }
  0x61   :  { %451 = vmatpush1.bf16.msra.mxu0 %v2239_v7 }
  0x62   :  { %452 = vmatprep.subr.bf16.mxu0 %v2242_v8 }
  0x63   :  { %1712 = vmatpush3.bf16.msra.mxu1 %v2260_v14 }
  0x64   :  { %1713 = vmatprep.subr.bf16.mxu1 %v2149_v2 }
  0x65   :  { %453 = vmatpush1.bf16.msra.mxu0 %v2247_v10 }
  0x66   :  { %454 = vmatprep.subr.bf16.mxu0 %v2251_v11 }
  0x67   :  { %1714 = vmatpush3.bf16.msra.mxu1 %v2270_v17 }
  0x68   :  { %1715 = vmatprep.subr.bf16.mxu1 %v2149_v2 }
  0x69   :  { %455 = vmatpush1.bf16.msra.mxu0 %v2256_v13 }
  0x6a   :  { %456 = vmatprep.subr.bf16.mxu0 %v2263_v15 }
  0x6b   :  { %1716 = vmatpush3.bf16.msra.mxu1 %v2280_v20 }
  0x6c   :  { %1717 = vmatprep.subr.bf16.mxu1 %v2149_v2 }
  0x6d   :  { %457 = vmatpush1.bf16.msra.mxu0 %v2267_v16 }
  0x6e   :  { %458 = vmatprep.subr.bf16.mxu0 %v2273_v18 }
  0x6f   :  { %1718 = vmatpush3.bf16.msra.mxu1 %v2290_v23 }
  0x70   :  { %1719 = vmatprep.subr.bf16.mxu1 %v2149_v2 }
  0x71   :  { %459 = vmatpush1.bf16.msra.mxu0 %v2277_v19 }
  0x72   :  { %460 = vmatprep.subr.bf16.mxu0 %v2283_v21 }
  0x73   :  { %1720 = vmatpush3.bf16.msra.mxu1 %v2296_v24 }
  0x74   :  { %1721 = vmatprep.subr.bf16.mxu1 %v2149_v2 }
  0x75   :  { %461 = vmatpush1.bf16.msra.mxu0 %v2287_v22 }
  0x76   :  { %593 = vmatprep.subr.bf16.mxu0 %v2221_v0 }
  0x77   :  { %1722 = vmatpush3.bf16.msra.mxu1 %v2302_v25 }
  0x78   :  { %1727 = vmatprep.subr.bf16.mxu1 %v2149_v2 }
 0x12b   :  { %v285_v45 = vpop.f32.mrb[0].mxu0 }
 0x12c   :  { %v292_v47 = vadd.f32 %v285_v45, %v168_v43  ;;  %v287_v48 = vpop.f32.mrb[1].mxu0 }
 0x12d   :  { %v289_v49 = vpop.f32.mrb[2].mxu0  ;;  %v293_v52 = vadd.f32 %v287_v48, %v169_v46  ;;  %v388_v54 = vpop.f32.mrb[0].mxu1  ;;  %v405_v48 = vstv %s1570_s15 }
 0x12e   :  { %v1559_v50 = vmul.f32 -1.442695, %v292_v47  ;;  %v290_v51 = vpop.f32.mrb[3].mxu0  ;;  %v1705_v55 = vpop.f32.mrb[1].mxu1  ;;  %v389_v27 = vadd.f32 %v2378_v26, %v388_v54  ;;  %v402_v47 = vstv %s1569_s14 }
 0x12f   :  { %v1560_v53 = vmul.f32 -1.442695, %v293_v52  ;;  %v391_v56 = vpop.f32.mrb[2].mxu1  ;;  %v403_v49 = vmul.f32 %v402_v47, %v2346_v28 }
 0x130   :  { %1950 = vpow2.f32 %v1559_v50  ;;  %v1706_v57 = vpop.f32.mrb[3].mxu1  ;;  %v406_v50 = vmul.f32 %v405_v48, %v2346_v28 }
 0x131   :  { %1952 = vpow2.f32 %v1560_v53  ;;  %v411_v51 = vrot.slane %v403_v49, %v2348_v31  ;;  %v415_v53 = vrot.slane %v403_v49, %v2352_v34 }
 0x132   :  { %v427_v52 = vrot.slane %v406_v50, %v2348_v31  ;;  %v431_v54 = vrot.slane %v406_v50, %v2352_v34 }
 0x134   :  { %v439_v55 = vsel %vm164_vm1, %v411_v51, %v427_v52  ;;  %v440_v57 = vsel %vm164_vm1, %v415_v53, %v431_v54 }
 0x135   :  { %v442_v56 = vadd.f32 %v439_v55, %v2360_v38  ;;  %v443_v61 = vadd.f32 %v440_v57, %v2366_v42 }
 0x13a   :  { %v1951_v58 = vpop.eup %1950 }
 0x13b   :  { %v300_v59 = vadd.f32 1.0, %v1951_v58  ;;  %v1953_v63 = vpop.eup %1952 }
 0x13c   :  { %v301_v36 = vadd.f32 1.0, %v1953_v63 }
 0x13d   :  { %1954 = vrcp.f32 %v300_v59 }
 0x13e   :  { %1956 = vrcp.f32 %v301_v36 }
 0x147   :  { %v1955_v39 = vpop.eup %1954 }
 0x148   :  { %v394_v32 = vmul.f32 %v1955_v39, %v389_v27  ;;  %v1957_v40 = vpop.eup %1956 }
 0x149   :  { %v397_v41 = vsub.f32 1.0, %v1957_v40  ;;  %v399_v45 = vmul.f32 0.0, %v1957_v40 }
 0x14a   :  { %v395_v33 = vadd.f32 %v394_v32, %v170_v37 }
 0x14c   :  { %1958 = vtanh.f32 %v395_v33 }
 0x156   :  { %v1959_v43 = vpop.eup %1958 }
 0x157   :  { %v398_v44 = vmul.f32 %v1959_v43, %v397_v41 }
 0x159   :  { %v2386_v46 = vadd.f32 %v399_v45, %v398_v44  ;;  %v419_v44 = vrot.slane %v403_v49, %v2371_v60  ;;  %v435_v45 = vrot.slane %v406_v50, %v2371_v60 }
 0x15b   :  { %v445_v35 = vpack.c.bf16 %v2386_v46, %v2386_v46  ;;  %v441_v47 = vsel %vm164_vm1, %v419_v44, %v435_v45 }
 0x15c   :  { %v444_v51 = vadd.f32 %v441_v47, %v2381_v29 }
 0x15d   :  { %479 = vmatmul.mubr.bf16.vlgmr.msra.gmra.mrb[4].mxu0 %v445_v35  ;;  %1724 = vmatmul.mubr.bf16.vlgmr.msra.gmra.mrb[4].mxu1 %v445_v35 }
 0x15e   :  { %594 = vmatpush1.bf16.msra.mxu0 %v2223_v1  ;;  %1728 = vmatpush3.bf16.msra.mxu1 %v2244_v9 }
 0x15f   :  { %595 = vmatprep.subr.bf16.mxu0 %v2228_v4  ;;  %1729 = vmatprep.subr.bf16.mxu1 %v2149_v2 }
 0x160   :  { %625 = vmatprep.mubr.bf16.mxu0 %v2150_v3  ;;  %1743 = vmatprep.mubr.msk.bf16.mxu1 %vm2151_vm0, %v2149_v2 }
 0x162   :  { %596 = vmatpush1.bf16.msra.mxu0 %v2233_v5  ;;  %1730 = vmatpush3.bf16.msra.mxu1 %v2254_v12 }
 0x163   :  { %597 = vmatprep.subr.bf16.mxu0 %v2236_v6  ;;  %1731 = vmatprep.subr.bf16.mxu1 %v2149_v2 }
 0x166   :  { %598 = vmatpush1.bf16.msra.mxu0 %v2239_v7  ;;  %1732 = vmatpush3.bf16.msra.mxu1 %v2260_v14 }
 0x167   :  { %599 = vmatprep.subr.bf16.mxu0 %v2242_v8  ;;  %1733 = vmatprep.subr.bf16.mxu1 %v2149_v2 }
 0x16a   :  { %600 = vmatpush1.bf16.msra.mxu0 %v2247_v10  ;;  %1734 = vmatpush3.bf16.msra.mxu1 %v2270_v17 }
 0x16b   :  { %601 = vmatprep.subr.bf16.mxu0 %v2251_v11  ;;  %1735 = vmatprep.subr.bf16.mxu1 %v2149_v2 }
 0x16e   :  { %602 = vmatpush1.bf16.msra.mxu0 %v2256_v13  ;;  %1736 = vmatpush3.bf16.msra.mxu1 %v2280_v20 }
 0x16f   :  { %603 = vmatprep.subr.bf16.mxu0 %v2263_v15  ;;  %1737 = vmatprep.subr.bf16.mxu1 %v2149_v2 }
 0x172   :  { %604 = vmatpush1.bf16.msra.mxu0 %v2267_v16  ;;  %1738 = vmatpush3.bf16.msra.mxu1 %v2290_v23 }
 0x173   :  { %605 = vmatprep.subr.bf16.mxu0 %v2273_v18  ;;  %1739 = vmatprep.subr.bf16.mxu1 %v2149_v2 }
 0x176   :  { %606 = vmatpush1.bf16.msra.mxu0 %v2277_v19  ;;  %1740 = vmatpush3.bf16.msra.mxu1 %v2296_v24 }
 0x177   :  { %607 = vmatprep.subr.bf16.mxu0 %v2283_v21  ;;  %1741 = vmatprep.subr.bf16.mxu1 %v2149_v2 }
 0x17a   :  { %608 = vmatpush1.bf16.msra.mxu0 %v2287_v22  ;;  %1742 = vmatpush3.bf16.msra.mxu1 %v2302_v25 }
 0x17b   :  { %740 = vmatprep.subr.bf16.mxu0 %v2221_v0  ;;  %1747 = vmatprep.subr.bf16.mxu1 %v2149_v2 }
 0x230   :  { %v480_v58 = vpop.f32.mrb[4].mxu0  ;;  %v535_v59 = vpop.f32.mrb[4].mxu1 }
 0x231   :  { %v487_v62 = vadd.f32 %v480_v58, %v442_v56  ;;  %v482_v63 = vpop.f32.mrb[5].mxu0  ;;  %v1725_v30 = vpop.f32.mrb[5].mxu1  ;;  %v536_v52 = vadd.f32 %v2378_v26, %v535_v59  ;;  %v552_v59 = vstv %s1574_s17 }
 0x232   :  { %v484_v36 = vpop.f32.mrb[6].mxu0  ;;  %v538_v27 = vpop.f32.mrb[6].mxu1  ;;  %v488_v33 = vadd.f32 %v482_v63, %v443_v61  ;;  %v553_v30 = vmul.f32 %v552_v59, %v2346_v28 }
 0x233   :  { %v1571_v37 = vmul.f32 -1.442695, %v487_v62  ;;  %v485_v39 = vpop.f32.mrb[7].mxu0  ;;  %v1726_v32 = vpop.f32.mrb[7].mxu1 }
 0x234   :  { %v1572_v40 = vmul.f32 -1.442695, %v488_v33  ;;  %v574_v27 = vrot.slane %v553_v30, %v2348_v31  ;;  %v578_v39 = vrot.slane %v553_v30, %v2352_v34 }
 0x235   :  { %1960 = vpow2.f32 %v1571_v37 }
 0x236   :  { %1962 = vpow2.f32 %v1572_v40 }
 0x23f   :  { %v1961_v41 = vpop.eup %1960 }
 0x240   :  { %v495_v43 = vadd.f32 1.0, %v1961_v41  ;;  %v1963_v35 = vpop.eup %1962 }
 0x241   :  { %v496_v48 = vadd.f32 1.0, %v1963_v35 }
 0x242   :  { %1964 = vrcp.f32 %v495_v43 }
 0x243   :  { %1966 = vrcp.f32 %v496_v48 }
 0x24c   :  { %v1965_v53 = vpop.eup %1964 }
 0x24d   :  { %v541_v54 = vmul.f32 %v1965_v53, %v536_v52  ;;  %v1967_v56 = vpop.eup %1966 }
 0x24e   :  { %v544_v57 = vsub.f32 1.0, %v1967_v56  ;;  %v546_v49 = vmul.f32 %v1967_v56, %v2386_v46  ;;  %v549_v46 = vstv %s1573_s16 }
 0x24f   :  { %v542_v55 = vadd.f32 %v541_v54, %v444_v51  ;;  %v550_v63 = vmul.f32 %v549_v46, %v2346_v28 }
 0x251   :  { %1968 = vtanh.f32 %v542_v55  ;;  %v558_v36 = vrot.slane %v550_v63, %v2348_v31  ;;  %v562_v37 = vrot.slane %v550_v63, %v2352_v34 }
 0x253   :  { %v586_v32 = vsel %vm164_vm1, %v558_v36, %v574_v27  ;;  %v587_v40 = vsel %vm164_vm1, %v562_v37, %v578_v39 }
 0x254   :  { %v589_v33 = vadd.f32 %v586_v32, %v2360_v38  ;;  %v590_v44 = vadd.f32 %v587_v40, %v2366_v42 }
 0x25b   :  { %v1969_v58 = vpop.eup %1968 }
 0x25c   :  { %v545_v61 = vmul.f32 %v1969_v58, %v544_v57 }
 0x25e   :  { %v2441_v50 = vadd.f32 %v546_v49, %v545_v61  ;;  %v566_v61 = vrot.slane %v550_v63, %v2371_v60  ;;  %v582_v49 = vrot.slane %v553_v30, %v2371_v60 }
 0x260   :  { %v592_v62 = vpack.c.bf16 %v2441_v50, %v2441_v50  ;;  %v588_v46 = vsel %vm164_vm1, %v566_v61, %v582_v49 }
 0x261   :  { %v591_v36 = vadd.f32 %v588_v46, %v2381_v29 }
 0x262   :  { %626 = vmatmul.mubr.bf16.vlgmr.msra.gmra.mrb[8].mxu0 %v592_v62  ;;  %1744 = vmatmul.mubr.bf16.vlgmr.msra.gmra.mrb[8].mxu1 %v592_v62 }
 0x263   :  { %741 = vmatpush1.bf16.msra.mxu0 %v2223_v1  ;;  %1748 = vmatpush3.bf16.msra.mxu1 %v2244_v9 }
 0x264   :  { %742 = vmatprep.subr.bf16.mxu0 %v2228_v4  ;;  %1749 = vmatprep.subr.bf16.mxu1 %v2149_v2 }
 0x265   :  { %772 = vmatprep.mubr.bf16.mxu0 %v2150_v3  ;;  %1763 = vmatprep.mubr.msk.bf16.mxu1 %vm2151_vm0, %v2149_v2 }
 0x267   :  { %743 = vmatpush1.bf16.msra.mxu0 %v2233_v5  ;;  %1750 = vmatpush3.bf16.msra.mxu1 %v2254_v12 }
 0x268   :  { %744 = vmatprep.subr.bf16.mxu0 %v2236_v6  ;;  %1751 = vmatprep.subr.bf16.mxu1 %v2149_v2 }
 0x26b   :  { %745 = vmatpush1.bf16.msra.mxu0 %v2239_v7  ;;  %1752 = vmatpush3.bf16.msra.mxu1 %v2260_v14 }
 0x26c   :  { %746 = vmatprep.subr.bf16.mxu0 %v2242_v8  ;;  %1753 = vmatprep.subr.bf16.mxu1 %v2149_v2 }
 0x26f   :  { %747 = vmatpush1.bf16.msra.mxu0 %v2247_v10  ;;  %1754 = vmatpush3.bf16.msra.mxu1 %v2270_v17 }
 0x270   :  { %748 = vmatprep.subr.bf16.mxu0 %v2251_v11  ;;  %1755 = vmatprep.subr.bf16.mxu1 %v2149_v2 }
 0x273   :  { %749 = vmatpush1.bf16.msra.mxu0 %v2256_v13  ;;  %1756 = vmatpush3.bf16.msra.mxu1 %v2280_v20 }
 0x274   :  { %750 = vmatprep.subr.bf16.mxu0 %v2263_v15  ;;  %1757 = vmatprep.subr.bf16.mxu1 %v2149_v2 }
 0x277   :  { %751 = vmatpush1.bf16.msra.mxu0 %v2267_v16  ;;  %1758 = vmatpush3.bf16.msra.mxu1 %v2290_v23 }
 0x278   :  { %752 = vmatprep.subr.bf16.mxu0 %v2273_v18  ;;  %1759 = vmatprep.subr.bf16.mxu1 %v2149_v2 }
 0x27b   :  { %753 = vmatpush1.bf16.msra.mxu0 %v2277_v19  ;;  %1760 = vmatpush3.bf16.msra.mxu1 %v2296_v24 }
 0x27c   :  { %754 = vmatprep.subr.bf16.mxu0 %v2283_v21  ;;  %1761 = vmatprep.subr.bf16.mxu1 %v2149_v2 }
 0x27f   :  { %755 = vmatpush1.bf16.msra.mxu0 %v2287_v22  ;;  %1762 = vmatpush3.bf16.msra.mxu1 %v2302_v25 }
 0x280   :  { %887 = vmatprep.subr.bf16.mxu0 %v2221_v0  ;;  %1767 = vmatprep.subr.bf16.mxu1 %v2149_v2 }
 0x335   :  { %v627_v41 = vpop.f32.mrb[8].mxu0  ;;  %v682_v43 = vpop.f32.mrb[8].mxu1 }
 0x336   :  { %v634_v45 = vadd.f32 %v627_v41, %v589_v33  ;;  %v629_v35 = vpop.f32.mrb[9].mxu0  ;;  %v1745_v47 = vpop.f32.mrb[9].mxu1  ;;  %v683_v27 = vadd.f32 %v2378_v26, %v682_v43  ;;  %v699_v43 = vstv %s1578_s19 }
 0x337   :  { %v631_v48 = vpop.f32.mrb[10].mxu0  ;;  %v685_v51 = vpop.f32.mrb[10].mxu1  ;;  %v635_v55 = vadd.f32 %v629_v35, %v590_v44  ;;  %v700_v47 = vmul.f32 %v699_v43, %v2346_v28 }
 0x338   :  { %v1575_v52 = vmul.f32 -1.442695, %v634_v45  ;;  %v632_v53 = vpop.f32.mrb[11].mxu0  ;;  %v1746_v54 = vpop.f32.mrb[11].mxu1 }
 0x339   :  { %v1576_v56 = vmul.f32 -1.442695, %v635_v55  ;;  %v721_v51 = vrot.slane %v700_v47, %v2348_v31  ;;  %v725_v53 = vrot.slane %v700_v47, %v2352_v34 }
 0x33a   :  { %1970 = vpow2.f32 %v1575_v52 }
 0x33b   :  { %1972 = vpow2.f32 %v1576_v56 }
 0x344   :  { %v1971_v57 = vpop.eup %1970 }
 0x345   :  { %v642_v58 = vadd.f32 1.0, %v1971_v57  ;;  %v1973_v62 = vpop.eup %1972 }
 0x346   :  { %v643_v59 = vadd.f32 1.0, %v1973_v62 }
 0x347   :  { %1974 = vrcp.f32 %v642_v58 }
 0x348   :  { %1976 = vrcp.f32 %v643_v59 }
 0x351   :  { %v1975_v37 = vpop.eup %1974 }
 0x352   :  { %v688_v39 = vmul.f32 %v1975_v37, %v683_v27  ;;  %v1977_v33 = vpop.eup %1976 }
 0x353   :  { %v691_v40 = vsub.f32 1.0, %v1977_v33  ;;  %v693_v63 = vmul.f32 %v1977_v33, %v2441_v50  ;;  %v696_v50 = vstv %s1577_s18 }
 0x354   :  { %v689_v32 = vadd.f32 %v688_v39, %v591_v36  ;;  %v697_v35 = vmul.f32 %v696_v50, %v2346_v28 }
 0x356   :  { %1978 = vtanh.f32 %v689_v32  ;;  %v705_v48 = vrot.slane %v697_v35, %v2348_v31  ;;  %v709_v52 = vrot.slane %v697_v35, %v2352_v34 }
 0x358   :  { %v733_v54 = vsel %vm164_vm1, %v705_v48, %v721_v51  ;;  %v734_v56 = vsel %vm164_vm1, %v709_v52, %v725_v53 }
 0x359   :  { %v736_v55 = vadd.f32 %v733_v54, %v2360_v38  ;;  %v737_v61 = vadd.f32 %v734_v56, %v2366_v42 }
 0x360   :  { %v1979_v41 = vpop.eup %1978 }
 0x361   :  { %v692_v44 = vmul.f32 %v1979_v41, %v691_v40 }
 0x363   :  { %v2496_v30 = vadd.f32 %v693_v63, %v692_v44  ;;  %v713_v44 = vrot.slane %v697_v35, %v2371_v60  ;;  %v729_v63 = vrot.slane %v700_v47, %v2371_v60 }
 0x365   :  { %v739_v45 = vpack.c.bf16 %v2496_v30, %v2496_v30  ;;  %v735_v50 = vsel %vm164_vm1, %v713_v44, %v729_v63 }
 0x366   :  { %v738_v48 = vadd.f32 %v735_v50, %v2381_v29 }
 0x367   :  { %773 = vmatmul.mubr.bf16.vlgmr.msra.gmra.mrb[12].mxu0 %v739_v45  ;;  %1764 = vmatmul.mubr.bf16.vlgmr.msra.gmra.mrb[12].mxu1 %v739_v45 }
 0x368   :  { %888 = vmatpush1.bf16.msra.mxu0 %v2223_v1  ;;  %1768 = vmatpush3.bf16.msra.mxu1 %v2244_v9 }
 0x369   :  { %889 = vmatprep.subr.bf16.mxu0 %v2228_v4  ;;  %1769 = vmatprep.subr.bf16.mxu1 %v2149_v2 }
 0x36a   :  { %919 = vmatprep.mubr.bf16.mxu0 %v2150_v3  ;;  %1783 = vmatprep.mubr.msk.bf16.mxu1 %vm2151_vm0, %v2149_v2 }
 0x36c   :  { %890 = vmatpush1.bf16.msra.mxu0 %v2233_v5  ;;  %1770 = vmatpush3.bf16.msra.mxu1 %v2254_v12 }
 0x36d   :  { %891 = vmatprep.subr.bf16.mxu0 %v2236_v6  ;;  %1771 = vmatprep.subr.bf16.mxu1 %v2149_v2 }
 0x370   :  { %892 = vmatpush1.bf16.msra.mxu0 %v2239_v7  ;;  %1772 = vmatpush3.bf16.msra.mxu1 %v2260_v14 }
 0x371   :  { %893 = vmatprep.subr.bf16.mxu0 %v2242_v8  ;;  %1773 = vmatprep.subr.bf16.mxu1 %v2149_v2 }
 0x374   :  { %894 = vmatpush1.bf16.msra.mxu0 %v2247_v10  ;;  %1774 = vmatpush3.bf16.msra.mxu1 %v2270_v17 }
 0x375   :  { %895 = vmatprep.subr.bf16.mxu0 %v2251_v11  ;;  %1775 = vmatprep.subr.bf16.mxu1 %v2149_v2 }
 0x378   :  { %896 = vmatpush1.bf16.msra.mxu0 %v2256_v13  ;;  %1776 = vmatpush3.bf16.msra.mxu1 %v2280_v20 }
 0x379   :  { %897 = vmatprep.subr.bf16.mxu0 %v2263_v15  ;;  %1777 = vmatprep.subr.bf16.mxu1 %v2149_v2 }
 0x37c   :  { %898 = vmatpush1.bf16.msra.mxu0 %v2267_v16  ;;  %1778 = vmatpush3.bf16.msra.mxu1 %v2290_v23 }
 0x37d   :  { %899 = vmatprep.subr.bf16.mxu0 %v2273_v18  ;;  %1779 = vmatprep.subr.bf16.mxu1 %v2149_v2 }
 0x380   :  { %900 = vmatpush1.bf16.msra.mxu0 %v2277_v19  ;;  %1780 = vmatpush3.bf16.msra.mxu1 %v2296_v24 }
 0x381   :  { %901 = vmatprep.subr.bf16.mxu0 %v2283_v21  ;;  %1781 = vmatprep.subr.bf16.mxu1 %v2149_v2 }
 0x384   :  { %902 = vmatpush1.bf16.msra.mxu0 %v2287_v22  ;;  %1782 = vmatpush3.bf16.msra.mxu1 %v2302_v25 }
 0x385   :  { %1034 = vmatprep.subr.bf16.mxu0 %v2221_v0  ;;  %1787 = vmatprep.subr.bf16.mxu1 %v2149_v2 }
 0x43a   :  { %v774_v57 = vpop.f32.mrb[12].mxu0  ;;  %v829_v58 = vpop.f32.mrb[12].mxu1 }
 0x43b   :  { %v781_v49 = vadd.f32 %v774_v57, %v736_v55  ;;  %v776_v62 = vpop.f32.mrb[13].mxu0  ;;  %v1765_v46 = vpop.f32.mrb[13].mxu1  ;;  %v830_v51 = vadd.f32 %v2378_v26, %v829_v58 }
 0x43c   :  { %v778_v59 = vpop.f32.mrb[14].mxu0  ;;  %v832_v36 = vpop.f32.mrb[14].mxu1  ;;  %v782_v32 = vadd.f32 %v776_v62, %v737_v61 }
 0x43d   :  { %v1579_v27 = vmul.f32 -1.442695, %v781_v49  ;;  %v779_v37 = vpop.f32.mrb[15].mxu0  ;;  %v1766_v39 = vpop.f32.mrb[15].mxu1 }
 0x43e   :  { %v1580_v33 = vmul.f32 -1.442695, %v782_v32 }
 0x43f   :  { %1980 = vpow2.f32 %v1579_v27 }
 0x440   :  { %1982 = vpow2.f32 %v1580_v33 }
 0x449   :  { %v1981_v40 = vpop.eup %1980 }
 0x44a   :  { %v789_v41 = vadd.f32 1.0, %v1981_v40  ;;  %v1983_v45 = vpop.eup %1982 }
 0x44b   :  { %v790_v43 = vadd.f32 1.0, %v1983_v45 }
 0x44c   :  { %1984 = vrcp.f32 %v789_v41 }
 0x44d   :  { %1986 = vrcp.f32 %v790_v43 }
 0x456   :  { %v1985_v52 = vpop.eup %1984 }
 0x457   :  { %v835_v53 = vmul.f32 %v1985_v52, %v830_v51  ;;  %v1987_v55 = vpop.eup %1986 }
 0x458   :  { %v838_v56 = vsub.f32 1.0, %v1987_v55  ;;  %v840_v35 = vmul.f32 %v1987_v55, %v2496_v30 }
 0x459   :  { %v836_v54 = vadd.f32 %v835_v53, %v738_v48 }
 0x45b   :  { %1988 = vtanh.f32 %v836_v54 }
 0x465   :  { %v1989_v57 = vpop.eup %1988 }
 0x466   :  { %v839_v61 = vmul.f32 %v1989_v57, %v838_v56 }
 0x468   :  { %v2551_v47 = vadd.f32 %v840_v35, %v839_v61 }
 0x46a   :  { %v886_v49 = vpack.c.bf16 %v2551_v47, %v2551_v47 }
 0x46c   :  { %920 = vmatmul.mubr.bf16.vlgmr.msra.gmra.mrb[16].mxu0 %v886_v49  ;;  %1784 = vmatmul.mubr.bf16.vlgmr.msra.gmra.mrb[16].mxu1 %v886_v49 }
 0x46d   :  { %1035 = vmatpush1.bf16.msra.mxu0 %v2223_v1  ;;  %1788 = vmatpush3.bf16.msra.mxu1 %v2244_v9  ;;  %v843_v1 = vstv %s1581_s20 }
 0x46e   :  { %1036 = vmatprep.subr.bf16.mxu0 %v2228_v4  ;;  %1789 = vmatprep.subr.bf16.mxu1 %v2149_v2  ;;  %v846_v4 = vstv %s1582_s21 }
 0x46f   :  { %1066 = vmatprep.mubr.bf16.mxu0 %v2150_v3  ;;  %1803 = vmatprep.mubr.msk.bf16.mxu1 %vm2151_vm0, %v2149_v2 }
 0x471   :  { %1037 = vmatpush1.bf16.msra.mxu0 %v2233_v5  ;;  %1790 = vmatpush3.bf16.msra.mxu1 %v2254_v12  ;;  %v844_v5 = vmul.f32 %v843_v1, %v2346_v28 }
 0x472   :  { %1038 = vmatprep.subr.bf16.mxu0 %v2236_v6  ;;  %1791 = vmatprep.subr.bf16.mxu1 %v2149_v2  ;;  %v847_v6 = vmul.f32 %v846_v4, %v2346_v28 }
 0x473   :  { %v860_v43 = vrot.slane %v844_v5, %v2371_v60 }
 0x474   :  { %v876_v48 = vrot.slane %v847_v6, %v2371_v60 }
 0x475   :  { %1039 = vmatpush1.bf16.msra.mxu0 %v2239_v7  ;;  %1792 = vmatpush3.bf16.msra.mxu1 %v2260_v14  ;;  %v852_v7 = vrot.slane %v844_v5, %v2348_v31 }
 0x476   :  { %1040 = vmatprep.subr.bf16.mxu0 %v2242_v8  ;;  %1793 = vmatprep.subr.bf16.mxu1 %v2149_v2  ;;  %v868_v8 = vrot.slane %v847_v6, %v2348_v31  ;;  %v882_v52 = vsel %vm164_vm1, %v860_v43, %v876_v48 }
 0x477   :  { %v885_v54 = vadd.f32 %v882_v52, %v2381_v29 }
 0x479   :  { %1041 = vmatpush1.bf16.msra.mxu0 %v2247_v10  ;;  %1794 = vmatpush3.bf16.msra.mxu1 %v2270_v17  ;;  %v856_v10 = vrot.slane %v844_v5, %v2352_v34 }
 0x47a   :  { %1042 = vmatprep.subr.bf16.mxu0 %v2251_v11  ;;  %1795 = vmatprep.subr.bf16.mxu1 %v2149_v2  ;;  %v872_v11 = vrot.slane %v847_v6, %v2352_v34 }
 0x47c   :  { %v881_v58 = vsel %vm164_vm1, %v856_v10, %v872_v11  ;;  %v2614_v10 = vld [vmem:[#allocation6 + $0x1c] ss:$12 sps:$4 sm:$0xff]   ;;  %v2625_v11 = vld [vmem:[#allocation6 + $0x34] ss:$12 sps:$4 sm:$0xff]  }
 0x47d   :  { %1043 = vmatpush1.bf16.msra.mxu0 %v2256_v13  ;;  %1796 = vmatpush3.bf16.msra.mxu1 %v2280_v20  ;;  %v884_v59 = vadd.f32 %v881_v58, %v2366_v42 }
 0x47e   :  { %1044 = vmatprep.subr.bf16.mxu0 %v2263_v15  ;;  %1797 = vmatprep.subr.bf16.mxu1 %v2149_v2 }
 0x481   :  { %1045 = vmatpush1.bf16.msra.mxu0 %v2267_v16  ;;  %1798 = vmatpush3.bf16.msra.mxu1 %v2290_v23 }
 0x482   :  { %1046 = vmatprep.subr.bf16.mxu0 %v2273_v18  ;;  %1799 = vmatprep.subr.bf16.mxu1 %v2149_v2 }
 0x485   :  { %1047 = vmatpush1.bf16.msra.mxu0 %v2277_v19  ;;  %1800 = vmatpush3.bf16.msra.mxu1 %v2296_v24 }
 0x486   :  { %1048 = vmatprep.subr.bf16.mxu0 %v2283_v21  ;;  %1801 = vmatprep.subr.bf16.mxu1 %v2149_v2 }
 0x489   :  { %1049 = vmatpush1.bf16.msra.mxu0 %v2287_v22  ;;  %1802 = vmatpush3.bf16.msra.mxu1 %v2302_v25 }
 0x48a   :  { %1181 = vmatprep.subr.bf16.mxu0 %v2221_v0  ;;  %1807 = vmatprep.subr.bf16.mxu1 %v2149_v2  ;;  %v880_v0 = vsel %vm164_vm1, %v852_v7, %v868_v8  ;;  %v2610_v8 = vld [vmem:[#allocation6] ss:$12 sps:$4 sm:$0xff]  }
 0x48b   :  { %v883_v30 = vadd.f32 %v880_v0, %v2360_v38  ;;  %v2633_v0 = vld [vmem:[#allocation6 + $0x4c] ss:$12 sps:$4 sm:$0xff]  }
 0x53f   :  { %v921_v62 = vpop.f32.mrb[16].mxu0  ;;  %v976_v46 = vpop.f32.mrb[16].mxu1 }
 0x540   :  { %v928_v36 = vadd.f32 %v921_v62, %v883_v30  ;;  %v923_v27 = vpop.f32.mrb[17].mxu0  ;;  %v1785_v37 = vpop.f32.mrb[17].mxu1  ;;  %v977_v55 = vadd.f32 %v2378_v26, %v976_v46  ;;  %v2637_v30 = vld [vmem:[#allocation6 + $0x48] ss:$12 sps:$4 sm:$0xff]  }
 0x541   :  { %v925_v39 = vpop.f32.mrb[18].mxu0  ;;  %v979_v32 = vpop.f32.mrb[18].mxu1  ;;  %v929_v44 = vadd.f32 %v923_v27, %v884_v59 }
 0x542   :  { %v1583_v33 = vmul.f32 -1.442695, %v928_v36  ;;  %v926_v40 = vpop.f32.mrb[19].mxu0  ;;  %v1786_v41 = vpop.f32.mrb[19].mxu1 }
 0x543   :  { %v1584_v63 = vmul.f32 -1.442695, %v929_v44 }
 0x544   :  { %1990 = vpow2.f32 %v1583_v33 }
 0x545   :  { %1992 = vpow2.f32 %v1584_v63 }
 0x54e   :  { %v1991_v45 = vpop.eup %1990 }
 0x54f   :  { %v936_v50 = vadd.f32 1.0, %v1991_v45  ;;  %v1993_v51 = vpop.eup %1992 }
 0x550   :  { %v937_v53 = vadd.f32 1.0, %v1993_v51 }
 0x551   :  { %1994 = vrcp.f32 %v936_v50 }
 0x552   :  { %1996 = vrcp.f32 %v937_v53 }
 0x55b   :  { %v1995_v56 = vpop.eup %1994 }
 0x55c   :  { %v982_v57 = vmul.f32 %v1995_v56, %v977_v55  ;;  %v1997_v35 = vpop.eup %1996 }
 0x55d   :  { %v985_v49 = vsub.f32 1.0, %v1997_v35  ;;  %v987_v5 = vmul.f32 %v1997_v35, %v2551_v47  ;;  %v2621_v47 = vld [vmem:[#allocation6 + $0x18] ss:$12 sps:$4 sm:$0xff]  }
 0x55e   :  { %v983_v61 = vadd.f32 %v982_v57, %v885_v54 }
 0x560   :  { %1998 = vtanh.f32 %v983_v61 }
 0x56a   :  { %v1999_v1 = vpop.eup %1998 }
 0x56b   :  { %v986_v4 = vmul.f32 %v1999_v1, %v985_v49 }
 0x56d   :  { %v2606_v6 = vadd.f32 %v987_v5, %v986_v4  ;;  %v2040_v5 = vld [vmem:[#allocation6 + $0x20] ss:$12 sps:$4 sm:$0xff]  }
 0x56f   :  { %v1033_v7 = vpack.c.bf16 %v2606_v6, %v2606_v6 }
 0x571   :  { %1067 = vmatmul.mubr.bf16.vlgmr.msra.gmra.mrb[20].mxu0 %v1033_v7  ;;  %1804 = vmatmul.mubr.bf16.vlgmr.msra.gmra.mrb[20].mxu1 %v1033_v7  ;;  %v2043_v7 = vld [vmem:[#allocation6 + $0x60] ss:$12 sps:$4 sm:$0xff]  }
 0x572   :  { %1182 = vmatpush1.bf16.msra.mxu0 %v2610_v8  ;;  %1808 = vmatpush3.bf16.msra.mxu1 %v2244_v9  ;;  %v2629_v9 = vld [vmem:[#allocation6 + $0x30] ss:$12 sps:$4 sm:$0xff]  }
 0x573   :  { %1183 = vmatprep.subr.bf16.mxu0 %v2614_v10  ;;  %1809 = vmatprep.subr.bf16.mxu1 %v2149_v2 }
 0x574   :  { %1213 = vmatprep.mubr.bf16.mxu0 %v2150_v3  ;;  %1823 = vmatprep.mubr.msk.bf16.mxu1 %vm2151_vm0, %v2149_v2 }
 0x576   :  { %1184 = vmatpush1.bf16.msra.mxu0 %v2621_v47  ;;  %1810 = vmatpush3.bf16.msra.mxu1 %v2254_v12  ;;  %v2641_v12 = vld [vmem:[#allocation6 + $0x64] ss:$12 sps:$4 sm:$0xff]  }
 0x577   :  { %1185 = vmatprep.subr.bf16.mxu0 %v2625_v11  ;;  %1811 = vmatprep.subr.bf16.mxu1 %v2149_v2 }
 0x57a   :  { %1186 = vmatpush1.bf16.msra.mxu0 %v2629_v9  ;;  %1812 = vmatpush3.bf16.msra.mxu1 %v2260_v14  ;;  %v990_v14 = vstv %s1585_s22 }
 0x57b   :  { %1187 = vmatprep.subr.bf16.mxu0 %v2633_v0  ;;  %1813 = vmatprep.subr.bf16.mxu1 %v2149_v2 }
 0x57e   :  { %1188 = vmatpush1.bf16.msra.mxu0 %v2637_v30  ;;  %1814 = vmatpush3.bf16.msra.mxu1 %v2270_v17 }
 0x57f   :  { %1189 = vmatprep.subr.bf16.mxu0 %v2641_v12  ;;  %1815 = vmatprep.subr.bf16.mxu1 %v2149_v2 }
 0x582   :  { %1190 = vmatpush1.bf16.msra.mxu0 %v2256_v13  ;;  %1816 = vmatpush3.bf16.msra.mxu1 %v2280_v20  ;;  %v2038_v13 = vld [vmem:[#allocation6 + $0x4] ss:$12 sps:$4 sm:$0xff]  }
 0x583   :  { %1191 = vmatprep.subr.bf16.mxu0 %v2263_v15  ;;  %1817 = vmatprep.subr.bf16.mxu1 %v2149_v2  ;;  %v993_v15 = vstv %s1586_s23 }
 0x584   :  { %v994_v17 = vmul.f32 %v993_v15, %v2346_v28  ;;  %v1137_v15 = vstv %s1589_s24 }
 0x586   :  { %1192 = vmatpush1.bf16.msra.mxu0 %v2267_v16  ;;  %1818 = vmatpush3.bf16.msra.mxu1 %v2290_v23  ;;  %v991_v16 = vmul.f32 %v990_v14, %v2346_v28  ;;  %v1023_v45 = vrot.slane %v994_v17, %v2371_v60  ;;  %v2053_v14 = vld [vmem:[#allocation6 + $0xb0] ss:$12 sps:$4 sm:$0xff]  }
 0x587   :  { %1193 = vmatprep.subr.bf16.mxu0 %v2273_v18  ;;  %1819 = vmatprep.subr.bf16.mxu1 %v2149_v2 }
 0x588   :  { %v999_v18 = vrot.slane %v991_v16, %v2348_v31  ;;  %v1003_v20 = vrot.slane %v991_v16, %v2352_v34  ;;  %v1007_v63 = vrot.slane %v991_v16, %v2371_v60  ;;  %v1140_v16 = vstv %s1590_s25 }
 0x58a   :  { %1194 = vmatpush1.bf16.msra.mxu0 %v2277_v19  ;;  %1820 = vmatpush3.bf16.msra.mxu1 %v2296_v24  ;;  %v1015_v19 = vrot.slane %v994_v17, %v2348_v31  ;;  %v1029_v43 = vsel %vm164_vm1, %v1007_v63, %v1023_v45 }
 0x58b   :  { %1195 = vmatprep.subr.bf16.mxu0 %v2283_v21  ;;  %1821 = vmatprep.subr.bf16.mxu1 %v2149_v2  ;;  %v1019_v21 = vrot.slane %v994_v17, %v2352_v34  ;;  %v1032_v51 = vadd.f32 %v1029_v43, %v2381_v29  ;;  %v2701_v17 = vld [vmem:[%s2762_s1] sm:$0x7] }
 0x58d   :  { %v1028_v24 = vsel %vm164_vm1, %v1003_v20, %v1019_v21 }
 0x58e   :  { %1196 = vmatpush1.bf16.msra.mxu0 %v2287_v22  ;;  %1822 = vmatpush3.bf16.msra.mxu1 %v2302_v25  ;;  %v1027_v22 = vsel %vm164_vm1, %v999_v18, %v1015_v19  ;;  %v1031_v62 = vadd.f32 %v1028_v24, %v2366_v42  ;;  %v1138_v18 = vmul.f32 %v2701_v17, %v1137_v15  ;;  %v1438_v15 = vld [vmem:[#allocation7 + $0x40] sm:$0xff] }
 0x58f   :  { %1328 = vmatprep.subr.bf16.mxu0 %v2038_v13  ;;  %1827 = vmatprep.subr.bf16.mxu1 %v2149_v2  ;;  %v1030_v23 = vadd.f32 %v1027_v22, %v2360_v38  ;;  %v2052_v13 = vld [vmem:[#allocation6 + $0xa8] ss:$12 sps:$4 sm:$0xff]   ;;  %v1141_v19 = vmul.f32 %v2701_v17, %v1140_v16 }
 0x590   :  { %v1146_v20 = vrot.slane %v1138_v18, %v2348_v31  ;;  %v1150_v22 = vrot.slane %v1138_v18, %v2352_v34  ;;  %v1439_v16 = vld [vmem:[#allocation7 + $0x48] sm:$0xff] }
 0x591   :  { %v1162_v21 = vrot.slane %v1141_v19, %v2348_v31  ;;  %v1170_v43 = vrot.slane %v1141_v19, %v2371_v60 }
 0x593   :  { %v1174_v24 = vsel %vm164_vm1, %v1146_v20, %v1162_v21  ;;  %v1441_v20 = vld [vmem:[#allocation7 + $0x58] sm:$0xff] }
 0x644   :  { %v1068_v25 = vpop.f32.mrb[20].mxu0  ;;  %v1123_v58 = vpop.f32.mrb[20].mxu1 }
 0x645   :  { %v1075_v46 = vadd.f32 %v1068_v25, %v1030_v23  ;;  %v1070_v28 = vpop.f32.mrb[21].mxu0  ;;  %v1805_v59 = vpop.f32.mrb[21].mxu1  ;;  %v1124_v52 = vadd.f32 %v2378_v26, %v1123_v58  ;;  %v2039_v26 = vld [vmem:[#allocation6 + $0x8] ss:$12 sps:$4 sm:$0xff]   ;;  %v1166_v23 = vrot.slane %v1141_v19, %v2352_v34  ;;  %v1177_v25 = vadd.f32 %v1174_v24, %v2360_v38 }
 0x646   :  { %v1072_v36 = vpop.f32.mrb[22].mxu0  ;;  %v1126_v27 = vpop.f32.mrb[22].mxu1  ;;  %v1076_v33 = vadd.f32 %v1070_v28, %v1031_v62  ;;  %v1440_v19 = vld [vmem:[#allocation7 + $0x50] sm:$0xff] }
 0x647   :  { %v1587_v37 = vmul.f32 -1.442695, %v1075_v46  ;;  %v1073_v39 = vpop.f32.mrb[23].mxu0  ;;  %v1806_v32 = vpop.f32.mrb[23].mxu1  ;;  %v1175_v58 = vsel %vm164_vm1, %v1150_v22, %v1166_v23  ;;  %v1898_v21 = vpack.c.bf16 %v1441_v20, %v1440_v19  ;;  %v1442_v22 = vld [vmem:[#allocation7 + $0x60] sm:$0xff]  ;;  %v1443_v23 = vld [vmem:[#allocation7 + $0x68] sm:$0xff] }
 0x648   :  { %v1588_v40 = vmul.f32 -1.442695, %v1076_v33  ;;  %v1178_v28 = vadd.f32 %v1175_v58, %v2366_v42  ;;  %v1901_v24 = vpack.c.bf16 %v1443_v23, %v1442_v22  ;;  %v1445_v58 = vld [vmem:[#allocation7 + $0x78] sm:$0xff] }
 0x649   :  { %2000 = vpow2.f32 %v1587_v37 }
 0x64a   :  { %2002 = vpow2.f32 %v1588_v40 }
 0x653   :  { %v2001_v41 = vpop.eup %2000 }
 0x654   :  { %v1083_v44 = vadd.f32 1.0, %v2001_v41  ;;  %v2003_v50 = vpop.eup %2002 }
 0x655   :  { %v1084_v48 = vadd.f32 1.0, %v2003_v50  ;;  %v1154_v50 = vrot.slane %v1138_v18, %v2371_v60  ;;  %v1895_v18 = vpack.c.bf16 %v1439_v16, %v1438_v15 }
 0x656   :  { %2004 = vrcp.f32 %v1083_v44 }
 0x657   :  { %2006 = vrcp.f32 %v1084_v48 }
 0x660   :  { %v2005_v53 = vpop.eup %2004 }
 0x661   :  { %v1129_v54 = vmul.f32 %v2005_v53, %v1124_v52  ;;  %v2007_v56 = vpop.eup %2006 }
 0x662   :  { %v1132_v57 = vsub.f32 1.0, %v2007_v56  ;;  %v1134_v49 = vmul.f32 %v2007_v56, %v2606_v6  ;;  %v2041_v6 = vld [vmem:[#allocation6 + $0x38] ss:$12 sps:$4 sm:$0xff]  }
 0x663   :  { %v1130_v55 = vadd.f32 %v1129_v54, %v1032_v51  ;;  %v1176_v51 = vsel %vm164_vm1, %v1154_v50, %v1170_v43  ;;  %v2720_v54 = vld [vmem:[%s2765_s4] ss:$0 sm:$0xff]  ;;  %s1593_s4 = sld [smem:[#allocation2 + $0x380]] }
 0x664   :  { %v1179_v53 = vadd.f32 %v1176_v51, %v2381_v29 }
 0x665   :  { %2008 = vtanh.f32 %v1130_v55 }
 0x66f   :  { %v2009_v61 = vpop.eup %2008 }
 0x670   :  { %v1133_v35 = vmul.f32 %v2009_v61, %v1132_v57 }
 0x672   :  { %v2676_v1 = vadd.f32 %v1134_v49, %v1133_v35 }
 0x674   :  { %v1180_v4 = vpack.c.bf16 %v2676_v1, %v2676_v1 }
 0x676   :  { %1214 = vmatmul.mubr.bf16.vlgmr.msra.gmra.mrb[24].mxu0 %v1180_v4  ;;  %1824 = vmatmul.mubr.bf16.vlgmr.msra.gmra.mrb[24].mxu1 %v1180_v4 }
 0x677   :  { %1329 = vmatpush1.bf16.msra.mxu0 %v2610_v8  ;;  %1828 = vmatpush3.bf16.msra.mxu1 %v2039_v26  ;;  %v2044_v8 = vld [vmem:[#allocation6 + $0x68] ss:$12 sps:$4 sm:$0xff]  }
 0x678   :  { %1330 = vmatprep.subr.bf16.mxu0 %v2614_v10  ;;  %1829 = vmatprep.subr.bf16.mxu1 %v2149_v2  ;;  %v2045_v10 = vld [vmem:[#allocation6 + $0x7c] ss:$12 sps:$4 sm:$0xff]  }
 0x679   :  { %1360 = vmatprep.mubr.bf16.mxu0 %v2150_v3  ;;  %1843 = vmatprep.mubr.msk.bf16.mxu1 %vm2151_vm0, %v2149_v2  ;;  %v2042_v3 = vld [vmem:[#allocation6 + $0x50] ss:$12 sps:$4 sm:$0xff]  }
 0x67b   :  { %1331 = vmatpush1.bf16.msra.mxu0 %v2621_v47  ;;  %1830 = vmatpush3.bf16.msra.mxu1 %v2040_v5  ;;  %v2046_v47 = vld [vmem:[#allocation6 + $0x78] ss:$12 sps:$4 sm:$0xff]  }
 0x67c   :  { %1332 = vmatprep.subr.bf16.mxu0 %v2625_v11  ;;  %1831 = vmatprep.subr.bf16.mxu1 %v2149_v2  ;;  %v2047_v11 = vld [vmem:[#allocation6 + $0x80] ss:$12 sps:$4 sm:$0xff]  }
 0x67f   :  { %1333 = vmatpush1.bf16.msra.mxu0 %v2629_v9  ;;  %1832 = vmatpush3.bf16.msra.mxu1 %v2041_v6  ;;  %v2048_v9 = vld [vmem:[#allocation6 + $0x94] ss:$12 sps:$4 sm:$0xff]  }
 0x680   :  { %1334 = vmatprep.subr.bf16.mxu0 %v2633_v0  ;;  %1833 = vmatprep.subr.bf16.mxu1 %v2149_v2  ;;  %v2049_v0 = vld [vmem:[#allocation6 + $0x90] ss:$12 sps:$4 sm:$0xff]  }
 0x683   :  { %1335 = vmatpush1.bf16.msra.mxu0 %v2637_v30  ;;  %1834 = vmatpush3.bf16.msra.mxu1 %v2042_v3  ;;  %v2050_v30 = vld [vmem:[#allocation6 + $0x98] ss:$12 sps:$4 sm:$0xff]  }
 0x684   :  { %1336 = vmatprep.subr.bf16.mxu0 %v2641_v12  ;;  %1835 = vmatprep.subr.bf16.mxu1 %v2149_v2  ;;  %v2051_v12 = vld [vmem:[#allocation6 + $0xac] ss:$12 sps:$4 sm:$0xff]  }
 0x687   :  { %1337 = vmatpush1.bf16.msra.mxu0 %v2043_v7  ;;  %1836 = vmatpush3.bf16.msra.mxu1 %v2044_v8  ;;  %v1430_v7 = vld [vmem:[#allocation7] sm:$0xff]  ;;  %v1431_v8 = vld [vmem:[#allocation7 + $0x8] sm:$0xff] }
 0x688   :  { %1338 = vmatprep.subr.bf16.mxu0 %v2045_v10  ;;  %1837 = vmatprep.subr.bf16.mxu1 %v2149_v2  ;;  %v1883_v10 = vpack.c.bf16 %v1431_v8, %v1430_v7 }
 0x68b   :  { %1339 = vmatpush1.bf16.msra.mxu0 %v2046_v47  ;;  %1838 = vmatpush3.bf16.msra.mxu1 %v2047_v11  ;;  %v2152_v47 = vmov 0.0|0.0   ;;  %v1432_v11 = vld [vmem:[#allocation7 + $0x10] sm:$0xff] }
 0x68c   :  { %1340 = vmatprep.subr.bf16.mxu0 %v2048_v9  ;;  %1839 = vmatprep.subr.bf16.mxu1 %v2149_v2  ;;  %v1433_v9 = vld [vmem:[#allocation7 + $0x18] sm:$0xff] }
 0x68f   :  { %1341 = vmatpush1.bf16.msra.mxu0 %v2049_v0  ;;  %1840 = vmatpush3.bf16.msra.mxu1 %v2050_v30  ;;  %v1434_v0 = vld [vmem:[#allocation7 + $0x20] sm:$0xff]  ;;  %v1435_v30 = vld [vmem:[#allocation7 + $0x28] sm:$0xff] }
 0x690   :  { %1342 = vmatprep.subr.bf16.mxu0 %v2051_v12  ;;  %1841 = vmatprep.subr.bf16.mxu1 %v2149_v2  ;;  %v1889_v12 = vpack.c.bf16 %v1435_v30, %v1434_v0 }
 0x693   :  { %1343 = vmatpush1.bf16.msra.mxu0 %v2052_v13  ;;  %1842 = vmatpush3.bf16.msra.mxu1 %v2053_v14  ;;  %v1436_v13 = vld [vmem:[#allocation7 + $0x30] sm:$0xff]  ;;  %v1437_v14 = vld [vmem:[#allocation7 + $0x38] sm:$0xff] }
 0x694   :  { %1882 = vmatprep.subr.bf16.mxu0 %v2152_v47 }
 0x749   :  { %v1215_v62 = vpop.f32.mrb[24].mxu0  ;;  %v1270_v46 = vpop.f32.mrb[24].mxu1 }
 0x74a   :  { %v1222_v59 = vadd.f32 %v1215_v62, %v1177_v25  ;;  %v1217_v36 = vpop.f32.mrb[25].mxu0  ;;  %v1825_v27 = vpop.f32.mrb[25].mxu1  ;;  %v1271_v55 = vadd.f32 %v2720_v54, %v1270_v46  ;;  %v1444_v25 = vld [vmem:[#allocation7 + $0x70] sm:$0xff]  ;;  %v1284_v46 = vstv %s1593_s4 }
 0x74b   :  { %v1219_v37 = vpop.f32.mrb[26].mxu0  ;;  %v1273_v39 = vpop.f32.mrb[26].mxu1  ;;  %v1223_v41 = vadd.f32 %v1217_v36, %v1178_v28  ;;  %v1904_v62 = vpack.c.bf16 %v1445_v58, %v1444_v25  ;;  %v1287_v28 = vstv %s1594_s2 }
 0x74c   :  { %v1591_v32 = vmul.f32 -1.442695, %v1222_v59  ;;  %v1220_v33 = vpop.f32.mrb[27].mxu0  ;;  %v1826_v40 = vpop.f32.mrb[27].mxu1  ;;  %v1285_v59 = vmul.f32 %v2701_v17, %v1284_v46  ;;  %v1288_v36 = vmul.f32 %v2701_v17, %v1287_v28 }
 0x74d   :  { %v1592_v44 = vmul.f32 -1.442695, %v1223_v41 }
 0x74e   :  { %2010 = vpow2.f32 %v1591_v32  ;;  %v1293_v27 = vrot.slane %v1285_v59, %v2348_v31  ;;  %v1309_v37 = vrot.slane %v1288_v36, %v2348_v31  ;;  %v1297_v39 = vrot.slane %v1285_v59, %v2352_v34 }
 0x74f   :  { %2012 = vpow2.f32 %v1592_v44  ;;  %v1313_v32 = vrot.slane %v1288_v36, %v2352_v34 }
 0x750   :  { %v1321_v33 = vsel %vm164_vm1, %v1293_v27, %v1309_v37 }
 0x751   :  { %v1324_v40 = vadd.f32 %v1321_v33, %v2360_v38  ;;  %v1322_v41 = vsel %vm164_vm1, %v1297_v39, %v1313_v32 }
 0x758   :  { %v2011_v63 = vpop.eup %2010 }
 0x759   :  { %v1230_v45 = vadd.f32 1.0, %v2011_v63  ;;  %v2013_v48 = vpop.eup %2012 }
 0x75a   :  { %v1231_v52 = vadd.f32 1.0, %v2013_v48 }
 0x75b   :  { %2014 = vrcp.f32 %v1230_v45  ;;  %v1325_v45 = vadd.f32 %v1322_v41, %v2366_v42 }
 0x75c   :  { %2016 = vrcp.f32 %v1231_v52 }
 0x765   :  { %v2015_v56 = vpop.eup %2014 }
 0x766   :  { %v1276_v57 = vmul.f32 %v2015_v56, %v1271_v55  ;;  %v2017_v35 = vpop.eup %2016 }
 0x767   :  { %v1279_v49 = vsub.f32 1.0, %v2017_v35  ;;  %v1281_v5 = vmul.f32 %v2017_v35, %v2676_v1  ;;  %v1886_v1 = vpack.c.bf16 %v1433_v9, %v1432_v11 }
 0x768   :  { %v1277_v61 = vadd.f32 %v1276_v57, %v1179_v53  ;;  %v1301_v57 = vrot.slane %v1285_v59, %v2371_v60 }
 0x76a   :  { %2018 = vtanh.f32 %v1277_v61  ;;  %v1317_v61 = vrot.slane %v1288_v36, %v2371_v60 }
 0x76c   :  { %v1323_v35 = vsel %vm164_vm1, %v1301_v57, %v1317_v61 }
 0x774   :  { %v2019_v4 = vpop.eup %2018 }
 0x775   :  { %v1280_v26 = vmul.f32 %v2019_v4, %v1279_v49  ;;  %v1326_v4 = vadd.f32 %v1323_v35, %v2381_v29 }
 0x777   :  { %v2724_v6 = vadd.f32 %v1281_v5, %v1280_v26 }
 0x779   :  { %v1327_v3 = vpack.c.bf16 %v2724_v6, %v2724_v6 }
 0x77b   :  { %1361 = vmatmul.mubr.bf16.vlgmr.msra.gmra.mrb[28].mxu0 %v1327_v3  ;;  %1844 = vmatmul.mubr.bf16.vlgmr.msra.gmra.mrb[28].mxu1 %v1327_v3 }
 0x77c   :  { %1879 = vmatprep.mubr.msk.f32.mxu0 %vm2151_vm0, %v2149_v2  ;;  %1884 = vmatpush3.bf16.msra.mxu0 %v1883_v10  ;;  %v1892_v2 = vpack.c.bf16 %v1437_v14, %v1436_v13 }
 0x77d   :  { %1885 = vmatprep.subr.bf16.mxu0 %v2152_v47 }
 0x780   :  { %1887 = vmatpush3.bf16.msra.mxu0 %v1886_v1  ;;  %v1597_v1 = vld [vmem:[%s2767_s6] ss:$0 sm:$0xff] }
 0x781   :  { %1888 = vmatprep.subr.bf16.mxu0 %v2152_v47 }
 0x784   :  { %1890 = vmatpush3.bf16.msra.mxu0 %v1889_v12 }
 0x785   :  { %1891 = vmatprep.subr.bf16.mxu0 %v2152_v47 }
 0x788   :  { %1893 = vmatpush3.bf16.msra.mxu0 %v1892_v2 }
 0x789   :  { %1894 = vmatprep.subr.bf16.mxu0 %v2152_v47 }
 0x78c   :  { %1896 = vmatpush3.bf16.msra.mxu0 %v1895_v18 }
 0x78d   :  { %1897 = vmatprep.subr.bf16.mxu0 %v2152_v47 }
 0x790   :  { %1899 = vmatpush3.bf16.msra.mxu0 %v1898_v21 }
 0x791   :  { %1900 = vmatprep.subr.bf16.mxu0 %v2152_v47 }
 0x794   :  { %1902 = vmatpush3.bf16.msra.mxu0 %v1901_v24 }
 0x795   :  { %1903 = vmatprep.subr.bf16.mxu0 %v2152_v47 }
 0x798   :  { %1905 = vmatpush3.bf16.msra.mxu0 %v1904_v62 }
 0x84e   :  { %v1362_v44 = vpop.f32.mrb[28].mxu0  ;;  %v1417_v63 = vpop.f32.mrb[28].mxu1 }
 0x84f   :  { %v1369_v50 = vadd.f32 %v1362_v44, %v1324_v40  ;;  %v1364_v17 = vpop.f32.mrb[29].mxu0  ;;  %v1845_v43 = vpop.f32.mrb[29].mxu1  ;;  %v1418_v26 = vadd.f32 %v2720_v54, %v1417_v63 }
 0x850   :  { %v1366_v48 = vpop.f32.mrb[30].mxu0  ;;  %v1420_v51 = vpop.f32.mrb[30].mxu1  ;;  %v1370_v55 = vadd.f32 %v1364_v17, %v1325_v45 }
 0x851   :  { %v1595_v31 = vmul.f32 -1.442695, %v1369_v50  ;;  %v1367_v52 = vpop.f32.mrb[31].mxu0  ;;  %v1846_v53 = vpop.f32.mrb[31].mxu1 }
 0x852   :  { %v1596_v34 = vmul.f32 -1.442695, %v1370_v55 }
 0x853   :  { %2020 = vpow2.f32 %v1595_v31 }
 0x854   :  { %2022 = vpow2.f32 %v1596_v34 }
 0x85d   :  { %v2021_v56 = vpop.eup %2020 }
 0x85e   :  { %v1377_v38 = vadd.f32 1.0, %v2021_v56  ;;  %v2023_v42 = vpop.eup %2022 }
 0x85f   :  { %v1378_v49 = vadd.f32 1.0, %v2023_v42 }
 0x860   :  { %2024 = vrcp.f32 %v1377_v38 }
 0x861   :  { %2026 = vrcp.f32 %v1378_v49 }
 0x86a   :  { %v2025_v5 = vpop.eup %2024 }
 0x86b   :  { %v1423_v3 = vmul.f32 %v2025_v5, %v1418_v26  ;;  %v2027_v8 = vpop.eup %2026 }
 0x86c   :  { %v1426_v10 = vsub.f32 1.0, %v2027_v8  ;;  %v1428_v9 = vmul.f32 %v2027_v8, %v2724_v6 }
 0x86d   :  { %v1424_v7 = vadd.f32 %v1423_v3, %v1326_v4 }
 0x86f   :  { %2028 = vtanh.f32 %v1424_v7 }
 0x879   :  { %v2029_v47 = vpop.eup %2028 }
 0x87a   :  { %v1427_v11 = vmul.f32 %v2029_v47, %v1426_v10 }
 0x87c   :  { %v1429_v60 = vadd.f32 %v1428_v9, %v1427_v11 }
 0x87e   :  { %1880 = vmatmul.mubr.f32.vlgmr.msra.gmra.mrb[32].mxu0 %v1429_v60 }
 0x951   :  { %v1519_v29 = vpop.f32.mrb[32].mxu0 }
 0x952   :  { %v1520_v54 = vadd.f32 %v1597_v1, %v1519_v29  ;;  %v1881_v0 = vpop.f32.mrb[33].mxu0 }
 0x954   :  { %1523 = vst [vmem:[#allocation9] sm:$0x3] %v1520_v54 }
 0x955   :  { %2123 = shalt.err (!%p2120_p11)
}
 0x956   :  { %s2124_s12 = scalar_lea.hbm %s2768_s7, 32 }
 0x957   :  { %p2125_p12 = scmp.ne.s32.totalorder %s2768_s7, %s2124_s12  ;;  %p2128_p13 = scmp.lt.u32.totalorder %s2124_s12, %s2768_s7 }
 0x959   :  { %p2130_p0 = pnand %p2128_p13, %p2125_p12 }
 0x95b   :  { %2133 = shalt.err (!%p2130_p0)
}
 0x95c   :  { %1533 = dma.vmem_to_hbm [thread:$0]  %s1531_s5, 32, %s2768_s7, [#allocation4]  }
 0x95d   :  { %2140 = dma.done.wait [#allocation4], 32  }
 0x95e   :  { %2141 = vsyncadd [#allocation4], 4294967264 }
 0x95f   :  { %1537 = vsyncpa [#allocation3], 1 }
 0x960   :  { %1538 = vsyncpa [#allocation8], 1 }
 0x961   :  { %1539 = vsyncpa [#allocation4], 1 }
 0x962   :  { %1540 = vsyncpa [#allocation5], 1 }

</bundles_post_ra>
